<compile_context>
chip_gen: v7x
topology: tpu7x:2x2x1
jax: 0.10.0
libtpu: 0.0.40
codegen_flags: <defaults>
</compile_context>

<pallas_src>
import math

import jax
import jax.numpy as jnp
from jax.experimental import pallas as pl
from jax.experimental.pallas import tpu as pltpu

# ---------------- config (small, consistent with the module defaults, scaled down) ----------
MASK_IDX, PAD_IDX, CLS_IDX = 2, 1, 3
VOCAB = 100
NUM_LAYERS = 2
EMB_DIM = 128
FFN_DIM = 256
NUM_HEADS = 4
HEAD_DIM = EMB_DIM // NUM_HEADS
MAX_SEQ_LEN = 16
ATTN_SCALE_FACTOR = 2
REL_POS_BINS = 32
MAX_REL_POS = 128
LN_EPS = 1e-5


# =====================================================================================
# Pallas kernel: all encoder layers fused; one batch block per "parallel" grid step,
# layers iterated on the "arbitrary" axis with the activation carried in VMEM scratch.
# =====================================================================================
def fused_encoder_kernel(x_ref, cos_ref, sina_ref, sinb_ref, bias_ref, hmask_ref,
                         wqkv_ref, bqkv_ref, wo_ref, bo_ref, ln1g_ref, ln1b_ref,
                         w1_ref, b1_ref, w2_ref, b2_ref, ln2g_ref, ln2b_ref,
                         o_ref, acc_ref):
    layer = pl.program_id(1)
    M, C = acc_ref.shape                       # M = Bt * T rows, C = emb_dim
    Bt, H, T, _ = bias_ref.shape

    @pl.when(layer == 0)
    def _():
        acc_ref[...] = x_ref[...]              # load the embedded tokens once per batch block

    x = acc_ref[...]                           # (M, C) f32 activation carried across layers
    cos = cos_ref[...]                         # (M, C) rotary tables (flattened in glue)
    sin_a = sina_ref[...]
    sin_b = sinb_ref[...]
    bias = bias_ref[...]                       # (Bt, H, T, T) incl. key-padding bias
    hmask = hmask_ref[...]                     # (H, 1, C) one-hot head-channel masks

    def _ln(v, g, b):
        mu = jnp.mean(v, axis=-1, keepdims=True)
        c = v - mu
        var = jnp.mean(c * c, axis=-1, keepdims=True)
        return c * jax.lax.rsqrt(var + LN_EPS) * g + b

    def _rope(t):
        # interleaved rotary; sign/parity already folded into sin_a / sin_b (wrap lanes are 0)
        return (t * cos
                + pltpu.roll(t, C - 1, axis=1) * sin_a     # t[i+1] term (even lanes)
                + pltpu.roll(t, 1, axis=1) * sin_b)        # t[i-1] term (odd lanes)

    # ---- fused QKV projection: one MXU pass, N = 3C; q-scaling folded into the weights ----
    qkv = jnp.dot(x.astype(jnp.bfloat16), wqkv_ref[0],
                  preferred_element_type=jnp.float32) + bqkv_ref[0]      # (M, 3C) f32
    q = _rope(qkv[:, :C])
    k = _rope(qkv[:, C:2 * C])
    v = qkv[:, 2 * C:]

    # ---- biased multi-head attention ----
    # heads selected by full-lane-width channel masks and accumulated into a full-width ctx
    # (no 32-lane sub-vreg extracts, no lane-concat of per-head results).
    ctx_rows = []
    for b in range(Bt):
        r0 = b * T
        qb = q[r0:r0 + T]                      # (T, C) sublane-aligned static row slices
        kb = k[r0:r0 + T]
        vb = v[r0:r0 + T]
        ctx_b = jnp.zeros((T, C), jnp.float32)
        for h in range(H):
            hm = hmask[h]                      # (1, C)
            s = jax.lax.dot_general(qb * hm, kb, (((1,), (1,)), ((), ())),
                                    preferred_element_type=jnp.float32)  # (T, T)
            s = s + bias[b, h]
            s = s - jnp.max(s, axis=-1, keepdims=True)
            p = jnp.exp(s)
            p = p * pl.reciprocal(jnp.sum(p, axis=-1, keepdims=True), approx=True)
            ctx_b = ctx_b + jnp.dot(p, vb * hm, preferred_element_type=jnp.float32)
        ctx_rows.append(ctx_b)
    ctx = jnp.concatenate(ctx_rows, axis=0) if Bt > 1 else ctx_rows[0]   # (M, C)

    attn = jnp.dot(ctx.astype(jnp.bfloat16), wo_ref[0],
                   preferred_element_type=jnp.float32) + bo_ref[0]

    # ---- residual + post-LayerNorm ----
    x = _ln(x + attn, ln1g_ref[0], ln1b_ref[0])

    # ---- FFN ----
    h1 = jnp.dot(x.astype(jnp.bfloat16), w1_ref[0],
                 preferred_element_type=jnp.float32) + b1_ref[0]
    h1 = jnp.maximum(h1, 0.0)                                            # relu
    h2 = jnp.dot(h1.astype(jnp.bfloat16), w2_ref[0],
                 preferred_element_type=jnp.float32) + b2_ref[0]
    x = _ln(x + h2, ln2g_ref[0], ln2b_ref[0])

    acc_ref[...] = x                           # carry to the next layer

    @pl.when(layer == pl.num_programs(1) - 1)
    def _():
        o_ref[...] = x.astype(o_ref.dtype)


def stack_layer_params(layers):
    """Stack per-layer params along a leading L axis; fuse QKV; fold q-scaling; bf16 weights."""
    scaling = (HEAD_DIM * ATTN_SCALE_FACTOR) ** -0.5

    def st(fn, dtype=None):
        a = jnp.stack([fn(lp) for lp in layers], axis=0)
        return a.astype(dtype) if dtype is not None else a

    return {
        'wqkv': st(lambda lp: jnp.concatenate(
            [lp['wq'] * scaling, lp['wk'], lp['wv']], axis=1), jnp.bfloat16),   # (L, C, 3C)
        'bqkv': st(lambda lp: jnp.concatenate(
            [lp['bq'] * scaling, lp['bk'], lp['bv']], axis=1)),                 # (L, 1, 3C)
        'wo': st(lambda lp: lp['wo'], jnp.bfloat16),
        'bo': st(lambda lp: lp['bo']),
        'ln1_g': st(lambda lp: lp['ln1_g']),
        'ln1_b': st(lambda lp: lp['ln1_b']),
        'w1': st(lambda lp: lp['w1'], jnp.bfloat16),
        'b1': st(lambda lp: lp['b1']),
        'w2': st(lambda lp: lp['w2'], jnp.bfloat16),
        'b2': st(lambda lp: lp['b2']),
        'ln2_g': st(lambda lp: lp['ln2_g']),
        'ln2_b': st(lambda lp: lp['ln2_b']),
    }


def run_encoder(x2d, cos, sin_a, sin_b, bias, hmask, stacked):
    """x2d/cos/sin_*: (B*Tc, C); bias: (B, H, Tc, Tc); hmask: (H, 1, C)."""
    M, C = x2d.shape
    B, H, Tc, _ = bias.shape
    L = NUM_LAYERS
    Bt = B                              # whole batch per grid step (M = Bt*Tc matmul rows)
    BM = Bt * Tc

    weight_names = ['wqkv', 'bqkv', 'wo', 'bo', 'ln1_g', 'ln1_b',
                    'w1', 'b1', 'w2', 'b2', 'ln2_g', 'ln2_b']
    weights = [stacked[n] for n in weight_names]

    def act_spec():
        return pl.BlockSpec((BM, C), lambda bb, l: (bb, 0))

    def layer_spec(a):
        return pl.BlockSpec((1,) + a.shape[1:], lambda bb, l: (l, 0, 0))

    in_specs = [
        act_spec(),                                                # x (embedded tokens)
        act_spec(), act_spec(), act_spec(),                        # cos / sin_a / sin_b
        pl.BlockSpec((Bt, H, Tc, Tc), lambda bb, l: (bb, 0, 0, 0)),  # attention bias (+pad)
        pl.BlockSpec(hmask.shape, lambda bb, l: (0, 0, 0)),        # head-channel masks
    ] + [layer_spec(w) for w in weights]

    flops = (L * M * (2 * C * 3 * C + 2 * C * C + 4 * C * FFN_DIM)
             + L * B * H * 4 * Tc * Tc * C)
    transcendentals = L * B * H * Tc * Tc
    bytes_accessed = sum(int(a.size) * a.dtype.itemsize
                         for a in [x2d, cos, sin_a, sin_b, bias, hmask] + weights)
    bytes_accessed += int(x2d.size) * x2d.dtype.itemsize           # output

    return pl.pallas_call(
        fused_encoder_kernel,
        out_shape=jax.ShapeDtypeStruct((M, C), jnp.float32),
        grid_spec=pltpu.PrefetchScalarGridSpec(
            num_scalar_prefetch=0,
            grid=(B // Bt, L),
            in_specs=in_specs,
            out_specs=act_spec(),
            scratch_shapes=[pltpu.VMEM((BM, C), jnp.float32)],
        ),
        compiler_params=pltpu.CompilerParams(
            dimension_semantics=("parallel", "arbitrary"),
            vmem_limit_bytes=32 * 1024 * 1024,
        ),
        cost_estimate=pl.CostEstimate(
            flops=int(flops),
            transcendentals=int(transcendentals),
            bytes_accessed=int(bytes_accessed),
        ),
    )(x2d, cos, sin_a, sin_b, bias, hmask, *weights)


# =====================================================================================
# JAX glue: embeddings, positional / relative biases, rotary angle tables
# =====================================================================================
def layer_norm(x, g, b, eps=LN_EPS):
    m = jnp.mean(x, -1, keepdims=True)
    v = jnp.mean((x - m) ** 2, -1, keepdims=True)
    return (x - m) / jnp.sqrt(v + eps) * g + b


def add_cls(x, cls_value):
    B = x.shape[0]
    return jnp.concatenate([jnp.full((B, 1), cls_value, dtype=x.dtype), x], axis=1)


def relative_position_bucket(rel, num_buckets=32, max_distance=128):
    # bidirectional=True branch of the reference
    num_buckets //= 2
    n = -rel
    ret = (n < 0).astype(jnp.int32) * num_buckets
    n = jnp.abs(n)
    max_exact = num_buckets // 2
    is_small = n < max_exact
    n_safe = jnp.maximum(n, 1).astype(jnp.float32)
    val_if_large = max_exact + (jnp.log(n_safe / max_exact)
                                / math.log(max_distance / max_exact)
                                * (num_buckets - max_exact)).astype(jnp.int32)
    val_if_large = jnp.minimum(val_if_large, num_buckets - 1)
    return ret + jnp.where(is_small, n, val_if_large)


def get_abs_pos_bias(params, counts, mask_count):
    B, T = counts.shape
    c = jnp.clip(counts, 0, MAX_SEQ_LEN - 1)
    weight = layer_norm(params['pos'][c], params['pos_ln_g'], params['pos_ln_b'])   # (B,T,C)
    pos_scaling = float(EMB_DIM / NUM_HEADS * ATTN_SCALE_FACTOR) ** -0.5

    def to_head(v):
        return v.reshape(*v.shape[:-1], NUM_HEADS, HEAD_DIM)

    pos_q = to_head(weight @ params['pos_q_w'] + params['pos_q_b']) * pos_scaling
    pos_k = to_head(weight @ params['pos_k_w'] + params['pos_k_b'])
    bias = jnp.einsum('bqhd,bkhd->bqkh', pos_q, pos_k)                              # (B,T,T,H)

    special = layer_norm(params['pos'][-4:], params['pos_ln_g'], params['pos_ln_b'])
    sq = to_head(special @ params['pos_q_w'] + params['pos_q_b']) * pos_scaling
    sk = to_head(special @ params['pos_k_w'] + params['pos_k_b'])
    sb = jnp.einsum('nhd,nhd->nh', sq, sk)                                          # (4,H)
    cls_2_other, other_2_cls, mask_2_other, other_2_mask = sb[0], sb[1], sb[2], sb[3]

    bias = jnp.where(mask_count[:, :, None, None], mask_2_other, bias)
    bias = jnp.where(mask_count[:, None, :, None], other_2_mask, bias)

    row = jnp.broadcast_to(cls_2_other, (B, 1, T, NUM_HEADS))
    bias = jnp.concatenate([row, bias], axis=1)                                     # (B,T+1,T,H)
    col = jnp.broadcast_to(other_2_cls, (B, T + 1, 1, NUM_HEADS))
    bias = jnp.concatenate([col, bias], axis=2)                                     # (B,T+1,T+1,H)
    return jnp.transpose(bias, (0, 3, 2, 1))        # matches torch .transpose(1, 3)


def get_rel_pos_bias(params, counts, mask_count):
    c = add_cls(counts, -123)
    mc = add_cls(mask_count, False)
    rel = c[:, None, :] - c[:, :, None]                                             # (B,Tc,Tc)
    rp = relative_position_bucket(rel, num_buckets=REL_POS_BINS, max_distance=MAX_REL_POS)
    rp = jnp.where(mc[:, None, :], REL_POS_BINS + 1, rp)    # rp.transpose(1,2)[mask] = bins+1
    rp = jnp.where(mc[:, :, None], REL_POS_BINS + 2, rp)    # rp[mask] = bins+2
    rp = rp.at[:, :, 0].set(REL_POS_BINS)
    rp = rp.at[:, 0, :].set(REL_POS_BINS // 2)
    values = params['rel_bias'][rp]                                                 # (B,Tc,Tc,H)
    return jnp.transpose(values, (0, 3, 1, 2))                                      # (B,H,Tc,Tc)


def rotary_cos_sin(count):
    """count: (B, Tc) integer positions -> cos/sin tables of shape (B, Tc, EMB_DIM)."""
    half = EMB_DIM // 2
    inv_freq = 1.0 / (10000.0 ** (jnp.arange(half, dtype=jnp.float32) / half))
    freqs = count.astype(jnp.float32)[..., None] * inv_freq                         # (B,Tc,half)
    freqs = jnp.repeat(freqs, 2, axis=-1)                                           # (B,Tc,C)
    return jnp.cos(freqs), jnp.sin(freqs)


def transformer_sentence_encoder(params, tokens, counts):
    B, T = tokens.shape
    Tc = T + 1

    # padding path is computed unconditionally (jit-safe, no host sync); all-zero pad == no-op
    pad = add_cls(tokens == PAD_IDX, False).astype(jnp.float32)                     # (B, Tc)

    # mask_model(mask=None) is identity for both tokens and counts
    mask_count = counts == -1

    bias = (get_abs_pos_bias(params, counts, mask_count)
            + get_rel_pos_bias(params, counts, mask_count))                         # (B,H,Tc,Tc)
    bias = bias + pad[:, None, None, :] * (-1e9)            # fold key-padding into the bias

    tok_cls = add_cls(tokens, CLS_IDX)
    x = params['embed_tokens'][tok_cls].astype(jnp.float32)                         # (B,Tc,C)
    # sin_pos / learned_pos / embed_scale / emb_layer_norm disabled (module defaults);
    # dropout is identity in eval mode.
    x = x * (1.0 - pad[..., None])

    count = add_cls(counts, -2) + 3
    cos, sin = rotary_cos_sin(count)                                                # (B,Tc,C)
    even = (jnp.arange(EMB_DIM) % 2) == 0
    sin_a = jnp.where(even, -sin, 0.0)     # multiplies roll(x, C-1) == x[i+1] (even lanes)
    sin_b = jnp.where(even, 0.0, sin)      # multiplies roll(x, 1)   == x[i-1] (odd lanes)

    hmask = (jnp.arange(EMB_DIM)[None, :] // HEAD_DIM
             == jnp.arange(NUM_HEADS)[:, None]).astype(jnp.float32)[:, None, :]     # (H,1,C)

    stacked = stack_layer_params(params['layers'])

    flat = lambda a: a.reshape(B * Tc, EMB_DIM)
    out = run_encoder(flat(x), flat(cos), flat(sin_a), flat(sin_b), bias, hmask, stacked)
    return out.reshape(B, Tc, EMB_DIM)                                              # (B,Tc,C)


# =====================================================================================
# deterministic parameter init (shapes follow the module __init__; BERT-style N(0, 0.02))
# =====================================================================================
def init_params(key):
    keys = iter(jax.random.split(key, 64))

    def nrm(shape, std=0.02):
        return jax.random.normal(next(keys), shape, jnp.float32) * std

    p = {}
    emb = nrm((VOCAB, EMB_DIM))
    p['embed_tokens'] = emb.at[PAD_IDX].set(0.0)
    pos = nrm((MAX_SEQ_LEN + 4, EMB_DIM))
    p['pos'] = pos.at[0].set(0.0)
    p['pos_q_w'] = nrm((EMB_DIM, EMB_DIM))
    p['pos_q_b'] = jnp.zeros((EMB_DIM,), jnp.float32)
    p['pos_k_w'] = nrm((EMB_DIM, EMB_DIM))
    p['pos_k_b'] = jnp.zeros((EMB_DIM,), jnp.float32)
    p['pos_ln_g'] = jnp.ones((EMB_DIM,), jnp.float32)
    p['pos_ln_b'] = jnp.zeros((EMB_DIM,), jnp.float32)
    p['rel_bias'] = nrm((REL_POS_BINS + 3, NUM_HEADS))

    layers = []
    for _ in range(NUM_LAYERS):
        lp = {
            'wq': nrm((EMB_DIM, EMB_DIM)), 'bq': jnp.zeros((1, EMB_DIM), jnp.float32),
            'wk': nrm((EMB_DIM, EMB_DIM)), 'bk': jnp.zeros((1, EMB_DIM), jnp.float32),
            'wv': nrm((EMB_DIM, EMB_DIM)), 'bv': jnp.zeros((1, EMB_DIM), jnp.float32),
            'wo': nrm((EMB_DIM, EMB_DIM)), 'bo': jnp.zeros((1, EMB_DIM), jnp.float32),
            'ln1_g': jnp.ones((1, EMB_DIM), jnp.float32),
            'ln1_b': jnp.zeros((1, EMB_DIM), jnp.float32),
            'w1': nrm((EMB_DIM, FFN_DIM)), 'b1': jnp.zeros((1, FFN_DIM), jnp.float32),
            'w2': nrm((FFN_DIM, EMB_DIM)), 'b2': jnp.zeros((1, EMB_DIM), jnp.float32),
            'ln2_g': jnp.ones((1, EMB_DIM), jnp.float32),
            'ln2_b': jnp.zeros((1, EMB_DIM), jnp.float32),
        }
        layers.append(lp)
    p['layers'] = layers
    return p


if __name__ == "__main__":
    key = jax.random.PRNGKey(0)
    pkey, tkey, ckey = jax.random.split(key, 3)
    params = init_params(pkey)

    B, T = 2, 7   # T + 1 (CLS) = 8, sublane-aligned
    tokens = jax.random.randint(tkey, (B, T), 4, VOCAB, dtype=jnp.int32)     # avoid pad/mask/cls ids
    counts = jax.random.randint(ckey, (B, T), 0, MAX_SEQ_LEN, dtype=jnp.int32)

    out = transformer_sentence_encoder(params, tokens, counts)
    out = jax.block_until_ready(out)

    assert out.shape == (B, T + 1, EMB_DIM), out.shape
    assert bool(jnp.all(jnp.isfinite(out)))
    print("KERNEL_OK")
</pallas_src>

<mosaic_0001>
module attributes {stable_mosaic.version = 11 : i64} {
  func.func @fused_encoder_kernel(%arg0: i32, %arg1: i32, %arg2: memref<16x128xf32, #tpu.memory_space<vmem>>, %arg3: memref<16x128xf32, #tpu.memory_space<vmem>>, %arg4: memref<16x128xf32, #tpu.memory_space<vmem>>, %arg5: memref<16x128xf32, #tpu.memory_space<vmem>>, %arg6: memref<2x4x8x8xf32, #tpu.memory_space<vmem>>, %arg7: memref<4x1x128xf32, #tpu.memory_space<vmem>>, %arg8: memref<1x128x384xbf16, #tpu.memory_space<vmem>>, %arg9: memref<1x1x384xf32, #tpu.memory_space<vmem>>, %arg10: memref<1x128x128xbf16, #tpu.memory_space<vmem>>, %arg11: memref<1x1x128xf32, #tpu.memory_space<vmem>>, %arg12: memref<1x1x128xf32, #tpu.memory_space<vmem>>, %arg13: memref<1x1x128xf32, #tpu.memory_space<vmem>>, %arg14: memref<1x128x256xbf16, #tpu.memory_space<vmem>>, %arg15: memref<1x1x256xf32, #tpu.memory_space<vmem>>, %arg16: memref<1x256x128xbf16, #tpu.memory_space<vmem>>, %arg17: memref<1x1x128xf32, #tpu.memory_space<vmem>>, %arg18: memref<1x1x128xf32, #tpu.memory_space<vmem>>, %arg19: memref<1x1x128xf32, #tpu.memory_space<vmem>>, %arg20: memref<16x128xf32, #tpu.memory_space<vmem>>, %arg21: memref<16x128xf32, #tpu.memory_space<vmem>>) attributes {dimension_semantics = [#tpu.dimension_semantics<parallel>, #tpu.dimension_semantics<arbitrary>], iteration_bounds = array<i64: 1, 2>, scalar_prefetch = 0 : i64, scratch_operands = 1 : i64, tpu.core_type = #tpu.core_type<tc>, window_params = [{transform_indices = @transform_0, window_bounds = array<i64: 16, 128>}, {transform_indices = @transform_1, window_bounds = array<i64: 16, 128>}, {transform_indices = @transform_2, window_bounds = array<i64: 16, 128>}, {transform_indices = @transform_3, window_bounds = array<i64: 16, 128>}, {transform_indices = @transform_4, window_bounds = array<i64: 2, 4, 8, 8>}, {pipeline_mode = #tpu.pipeline_mode<synchronous>, transform_indices = @transform_5, window_bounds = array<i64: 4, 1, 128>}, {transform_indices = @transform_6, window_bounds = array<i64: 1, 128, 384>}, {transform_indices = @transform_7, window_bounds = array<i64: 1, 1, 384>}, {transform_indices = @transform_8, window_bounds = array<i64: 1, 128, 128>}, {transform_indices = @transform_9, window_bounds = array<i64: 1, 1, 128>}, {transform_indices = @transform_10, window_bounds = array<i64: 1, 1, 128>}, {transform_indices = @transform_11, window_bounds = array<i64: 1, 1, 128>}, {transform_indices = @transform_12, window_bounds = array<i64: 1, 128, 256>}, {transform_indices = @transform_13, window_bounds = array<i64: 1, 1, 256>}, {transform_indices = @transform_14, window_bounds = array<i64: 1, 256, 128>}, {transform_indices = @transform_15, window_bounds = array<i64: 1, 1, 128>}, {transform_indices = @transform_16, window_bounds = array<i64: 1, 1, 128>}, {transform_indices = @transform_17, window_bounds = array<i64: 1, 1, 128>}, {transform_indices = @transform_18, window_bounds = array<i64: 16, 128>}]} {
    %c0_i32 = arith.constant 0 : i32
    %0 = arith.cmpi eq, %arg1, %c0_i32 : i32
    %1 = arith.extui %0 : i1 to i32
    %c0_i32_0 = arith.constant 0 : i32
    %2 = arith.cmpi ne, %1, %c0_i32_0 : i32
    scf.if %2 {
      %c0_105 = arith.constant 0 : index
      %c0_106 = arith.constant 0 : index
      %299 = vector.load %arg2[%c0_105, %c0_106] : memref<16x128xf32, #tpu.memory_space<vmem>>, vector<16x128xf32>
      %c0_107 = arith.constant 0 : index
      %c0_108 = arith.constant 0 : index
      %300 = vector.load %arg21[%c0_107, %c0_108] : memref<16x128xf32, #tpu.memory_space<vmem>>, vector<16x128xf32>
      tpu.vector_store %arg21[%c0_107, %c0_108], %299 {strides = array<i32>} : memref<16x128xf32, #tpu.memory_space<vmem>>, vector<16x128xf32>,
    } else {
    }
    %c0 = arith.constant 0 : index
    %c0_1 = arith.constant 0 : index
    %3 = vector.load %arg21[%c0, %c0_1] : memref<16x128xf32, #tpu.memory_space<vmem>>, vector<16x128xf32>
    %c0_2 = arith.constant 0 : index
    %c0_3 = arith.constant 0 : index
    %4 = vector.load %arg3[%c0_2, %c0_3] : memref<16x128xf32, #tpu.memory_space<vmem>>, vector<16x128xf32>
    %c0_4 = arith.constant 0 : index
    %c0_5 = arith.constant 0 : index
    %5 = vector.load %arg4[%c0_4, %c0_5] : memref<16x128xf32, #tpu.memory_space<vmem>>, vector<16x128xf32>
    %c0_6 = arith.constant 0 : index
    %c0_7 = arith.constant 0 : index
    %6 = vector.load %arg5[%c0_6, %c0_7] : memref<16x128xf32, #tpu.memory_space<vmem>>, vector<16x128xf32>
    %c0_8 = arith.constant 0 : index
    %c0_9 = arith.constant 0 : index
    %c0_10 = arith.constant 0 : index
    %c0_11 = arith.constant 0 : index
    %7 = vector.load %arg6[%c0_8, %c0_9, %c0_10, %c0_11] : memref<2x4x8x8xf32, #tpu.memory_space<vmem>>, vector<2x4x8x8xf32>
    %c0_12 = arith.constant 0 : index
    %c0_13 = arith.constant 0 : index
    %c0_14 = arith.constant 0 : index
    %8 = vector.load %arg7[%c0_12, %c0_13, %c0_14] : memref<4x1x128xf32, #tpu.memory_space<vmem>>, vector<4x1x128xf32>
    %9 = arith.truncf %3 : vector<16x128xf32> to vector<16x128xbf16>
    %c0_15 = arith.constant 0 : index
    %c0_16 = arith.constant 0 : index
    %c0_17 = arith.constant 0 : index
    %10 = vector.load %arg8[%c0_15, %c0_16, %c0_17] : memref<1x128x384xbf16, #tpu.memory_space<vmem>>, vector<1x128x384xbf16>
    %11 = vector.shape_cast %10 : vector<1x128x384xbf16> to vector<128x384xbf16>
    %cst = arith.constant dense<0.000000e+00> : vector<16x384xf32>
    %12 = tpu.matmul %9, %11, %cst {dimension_numbers = #tpu.dot_dimension_numbers<[1], [0], [0], [1], [0, 0, 1, 1], [], []>} : vector<16x128xbf16>, vector<128x384xbf16>, vector<16x384xf32> -> vector<16x384xf32>
    %c0_18 = arith.constant 0 : index
    %c0_19 = arith.constant 0 : index
    %c0_20 = arith.constant 0 : index
    %13 = vector.load %arg9[%c0_18, %c0_19, %c0_20] : memref<1x1x384xf32, #tpu.memory_space<vmem>>, vector<1x1x384xf32>
    %14 = vector.shape_cast %13 : vector<1x1x384xf32> to vector<1x384xf32>
    %15 = vector.broadcast %14 : vector<1x384xf32> to vector<16x384xf32>
    %16 = arith.addf %12, %15 : vector<16x384xf32>
    %17 = vector.extract_strided_slice %16 {offsets = [0, 0], sizes = [16, 128], strides = [1, 1]} : vector<16x384xf32> to vector<16x128xf32>
    %18 = arith.mulf %17, %4 : vector<16x128xf32>
    %c127_i32 = arith.constant 127 : i32
    %19 = tpu.dynamic_rotate %17 by %c127_i32 dim 1 : vector<16x128xf32>, i32 -> vector<16x128xf32>
    %20 = arith.mulf %19, %5 : vector<16x128xf32>
    %21 = arith.addf %18, %20 : vector<16x128xf32>
    %c1_i32 = arith.constant 1 : i32
    %22 = tpu.dynamic_rotate %17 by %c1_i32 dim 1 : vector<16x128xf32>, i32 -> vector<16x128xf32>
    %23 = arith.mulf %22, %6 : vector<16x128xf32>
    %24 = arith.addf %21, %23 : vector<16x128xf32>
    %25 = vector.extract_strided_slice %16 {offsets = [0, 128], sizes = [16, 128], strides = [1, 1]} : vector<16x384xf32> to vector<16x128xf32>
    %26 = arith.mulf %25, %4 : vector<16x128xf32>
    %c127_i32_21 = arith.constant 127 : i32
    %27 = tpu.dynamic_rotate %25 by %c127_i32_21 dim 1 : vector<16x128xf32>, i32 -> vector<16x128xf32>
    %28 = arith.mulf %27, %5 : vector<16x128xf32>
    %29 = arith.addf %26, %28 : vector<16x128xf32>
    %c1_i32_22 = arith.constant 1 : i32
    %30 = tpu.dynamic_rotate %25 by %c1_i32_22 dim 1 : vector<16x128xf32>, i32 -> vector<16x128xf32>
    %31 = arith.mulf %30, %6 : vector<16x128xf32>
    %32 = arith.addf %29, %31 : vector<16x128xf32>
    %33 = vector.extract_strided_slice %16 {offsets = [0, 256], sizes = [16, 128], strides = [1, 1]} : vector<16x384xf32> to vector<16x128xf32>
    %34 = vector.extract_strided_slice %24 {offsets = [0, 0], sizes = [8, 128], strides = [1, 1]} : vector<16x128xf32> to vector<8x128xf32>
    %35 = vector.extract_strided_slice %32 {offsets = [0, 0], sizes = [8, 128], strides = [1, 1]} : vector<16x128xf32> to vector<8x128xf32>
    %36 = vector.extract_strided_slice %33 {offsets = [0, 0], sizes = [8, 128], strides = [1, 1]} : vector<16x128xf32> to vector<8x128xf32>
    %cst_23 = arith.constant 0.000000e+00 : f32
    %37 = vector.broadcast %cst_23 : f32 to vector<8x128xf32>
    %38 = vector.extract_strided_slice %8 {offsets = [0, 0, 0], sizes = [1, 1, 128], strides = [1, 1, 1]} : vector<4x1x128xf32> to vector<1x1x128xf32>
    %39 = vector.shape_cast %38 : vector<1x1x128xf32> to vector<1x128xf32>
    %40 = vector.broadcast %39 : vector<1x128xf32> to vector<8x128xf32>
    %41 = arith.mulf %34, %40 : vector<8x128xf32>
    %cst_24 = arith.constant dense<0.000000e+00> : vector<8x8xf32>
    %42 = tpu.matmul %41, %35, %cst_24 {dimension_numbers = #tpu.dot_dimension_numbers<[1], [1], [0], [0], [0, 0, 1, 0], [], []>} : vector<8x128xf32>, vector<8x128xf32>, vector<8x8xf32> -> vector<8x8xf32>
    %43 = vector.extract_strided_slice %7 {offsets = [0, 0, 0, 0], sizes = [1, 1, 8, 8], strides = [1, 1, 1, 1]} : vector<2x4x8x8xf32> to vector<1x1x8x8xf32>
    %44 = vector.shape_cast %43 : vector<1x1x8x8xf32> to vector<8x8xf32>
    %45 = arith.addf %42, %44 : vector<8x8xf32>
    %cst_25 = arith.constant dense<0xFF800000> : vector<8xf32>
    %46 = vector.multi_reduction <maximumf>, %45, %cst_25 [1] : vector<8x8xf32> to vector<8xf32>
    %47 = vector.shape_cast %46 : vector<8xf32> to vector<8x1xf32>
    %48 = vector.broadcast %47 : vector<8x1xf32> to vector<8x8xf32>
    %49 = arith.subf %45, %48 : vector<8x8xf32>
    %50 = math.exp %49 : vector<8x8xf32>
    %cst_26 = arith.constant dense<0.000000e+00> : vector<8xf32>
    %51 = vector.multi_reduction <add>, %50, %cst_26 [1] : vector<8x8xf32> to vector<8xf32>
    %52 = vector.shape_cast %51 : vector<8xf32> to vector<8x1xf32>
    %53 = tpu.reciprocal %52 {approx = true} : vector<8x1xf32> -> vector<8x1xf32>
    %54 = vector.broadcast %53 : vector<8x1xf32> to vector<8x8xf32>
    %55 = arith.mulf %50, %54 : vector<8x8xf32>
    %56 = vector.broadcast %39 : vector<1x128xf32> to vector<8x128xf32>
    %57 = arith.mulf %36, %56 : vector<8x128xf32>
    %cst_27 = arith.constant dense<0.000000e+00> : vector<8x128xf32>
    %58 = tpu.matmul %55, %57, %cst_27 {dimension_numbers = #tpu.dot_dimension_numbers<[1], [0], [0], [1], [0, 0, 1, 1], [], []>} : vector<8x8xf32>, vector<8x128xf32>, vector<8x128xf32> -> vector<8x128xf32>
    %59 = arith.addf %37, %58 : vector<8x128xf32>
    %60 = vector.extract_strided_slice %8 {offsets = [1, 0, 0], sizes = [1, 1, 128], strides = [1, 1, 1]} : vector<4x1x128xf32> to vector<1x1x128xf32>
    %61 = vector.shape_cast %60 : vector<1x1x128xf32> to vector<1x128xf32>
    %62 = vector.broadcast %61 : vector<1x128xf32> to vector<8x128xf32>
    %63 = arith.mulf %34, %62 : vector<8x128xf32>
    %cst_28 = arith.constant dense<0.000000e+00> : vector<8x8xf32>
    %64 = tpu.matmul %63, %35, %cst_28 {dimension_numbers = #tpu.dot_dimension_numbers<[1], [1], [0], [0], [0, 0, 1, 0], [], []>} : vector<8x128xf32>, vector<8x128xf32>, vector<8x8xf32> -> vector<8x8xf32>
    %65 = vector.extract_strided_slice %7 {offsets = [0, 1, 0, 0], sizes = [1, 1, 8, 8], strides = [1, 1, 1, 1]} : vector<2x4x8x8xf32> to vector<1x1x8x8xf32>
    %66 = vector.shape_cast %65 : vector<1x1x8x8xf32> to vector<8x8xf32>
    %67 = arith.addf %64, %66 : vector<8x8xf32>
    %cst_29 = arith.constant dense<0xFF800000> : vector<8xf32>
    %68 = vector.multi_reduction <maximumf>, %67, %cst_29 [1] : vector<8x8xf32> to vector<8xf32>
    %69 = vector.shape_cast %68 : vector<8xf32> to vector<8x1xf32>
    %70 = vector.broadcast %69 : vector<8x1xf32> to vector<8x8xf32>
    %71 = arith.subf %67, %70 : vector<8x8xf32>
    %72 = math.exp %71 : vector<8x8xf32>
    %cst_30 = arith.constant dense<0.000000e+00> : vector<8xf32>
    %73 = vector.multi_reduction <add>, %72, %cst_30 [1] : vector<8x8xf32> to vector<8xf32>
    %74 = vector.shape_cast %73 : vector<8xf32> to vector<8x1xf32>
    %75 = tpu.reciprocal %74 {approx = true} : vector<8x1xf32> -> vector<8x1xf32>
    %76 = vector.broadcast %75 : vector<8x1xf32> to vector<8x8xf32>
    %77 = arith.mulf %72, %76 : vector<8x8xf32>
    %78 = vector.broadcast %61 : vector<1x128xf32> to vector<8x128xf32>
    %79 = arith.mulf %36, %78 : vector<8x128xf32>
    %cst_31 = arith.constant dense<0.000000e+00> : vector<8x128xf32>
    %80 = tpu.matmul %77, %79, %cst_31 {dimension_numbers = #tpu.dot_dimension_numbers<[1], [0], [0], [1], [0, 0, 1, 1], [], []>} : vector<8x8xf32>, vector<8x128xf32>, vector<8x128xf32> -> vector<8x128xf32>
    %81 = arith.addf %59, %80 : vector<8x128xf32>
    %82 = vector.extract_strided_slice %8 {offsets = [2, 0, 0], sizes = [1, 1, 128], strides = [1, 1, 1]} : vector<4x1x128xf32> to vector<1x1x128xf32>
    %83 = vector.shape_cast %82 : vector<1x1x128xf32> to vector<1x128xf32>
    %84 = vector.broadcast %83 : vector<1x128xf32> to vector<8x128xf32>
    %85 = arith.mulf %34, %84 : vector<8x128xf32>
    %cst_32 = arith.constant dense<0.000000e+00> : vector<8x8xf32>
    %86 = tpu.matmul %85, %35, %cst_32 {dimension_numbers = #tpu.dot_dimension_numbers<[1], [1], [0], [0], [0, 0, 1, 0], [], []>} : vector<8x128xf32>, vector<8x128xf32>, vector<8x8xf32> -> vector<8x8xf32>
    %87 = vector.extract_strided_slice %7 {offsets = [0, 2, 0, 0], sizes = [1, 1, 8, 8], strides = [1, 1, 1, 1]} : vector<2x4x8x8xf32> to vector<1x1x8x8xf32>
    %88 = vector.shape_cast %87 : vector<1x1x8x8xf32> to vector<8x8xf32>
    %89 = arith.addf %86, %88 : vector<8x8xf32>
    %cst_33 = arith.constant dense<0xFF800000> : vector<8xf32>
    %90 = vector.multi_reduction <maximumf>, %89, %cst_33 [1] : vector<8x8xf32> to vector<8xf32>
    %91 = vector.shape_cast %90 : vector<8xf32> to vector<8x1xf32>
    %92 = vector.broadcast %91 : vector<8x1xf32> to vector<8x8xf32>
    %93 = arith.subf %89, %92 : vector<8x8xf32>
    %94 = math.exp %93 : vector<8x8xf32>
    %cst_34 = arith.constant dense<0.000000e+00> : vector<8xf32>
    %95 = vector.multi_reduction <add>, %94, %cst_34 [1] : vector<8x8xf32> to vector<8xf32>
    %96 = vector.shape_cast %95 : vector<8xf32> to vector<8x1xf32>
    %97 = tpu.reciprocal %96 {approx = true} : vector<8x1xf32> -> vector<8x1xf32>
    %98 = vector.broadcast %97 : vector<8x1xf32> to vector<8x8xf32>
    %99 = arith.mulf %94, %98 : vector<8x8xf32>
    %100 = vector.broadcast %83 : vector<1x128xf32> to vector<8x128xf32>
    %101 = arith.mulf %36, %100 : vector<8x128xf32>
    %cst_35 = arith.constant dense<0.000000e+00> : vector<8x128xf32>
    %102 = tpu.matmul %99, %101, %cst_35 {dimension_numbers = #tpu.dot_dimension_numbers<[1], [0], [0], [1], [0, 0, 1, 1], [], []>} : vector<8x8xf32>, vector<8x128xf32>, vector<8x128xf32> -> vector<8x128xf32>
    %103 = arith.addf %81, %102 : vector<8x128xf32>
    %104 = vector.extract_strided_slice %8 {offsets = [3, 0, 0], sizes = [1, 1, 128], strides = [1, 1, 1]} : vector<4x1x128xf32> to vector<1x1x128xf32>
    %105 = vector.shape_cast %104 : vector<1x1x128xf32> to vector<1x128xf32>
    %106 = vector.broadcast %105 : vector<1x128xf32> to vector<8x128xf32>
    %107 = arith.mulf %34, %106 : vector<8x128xf32>
    %cst_36 = arith.constant dense<0.000000e+00> : vector<8x8xf32>
    %108 = tpu.matmul %107, %35, %cst_36 {dimension_numbers = #tpu.dot_dimension_numbers<[1], [1], [0], [0], [0, 0, 1, 0], [], []>} : vector<8x128xf32>, vector<8x128xf32>, vector<8x8xf32> -> vector<8x8xf32>
    %109 = vector.extract_strided_slice %7 {offsets = [0, 3, 0, 0], sizes = [1, 1, 8, 8], strides = [1, 1, 1, 1]} : vector<2x4x8x8xf32> to vector<1x1x8x8xf32>
    %110 = vector.shape_cast %109 : vector<1x1x8x8xf32> to vector<8x8xf32>
    %111 = arith.addf %108, %110 : vector<8x8xf32>
    %cst_37 = arith.constant dense<0xFF800000> : vector<8xf32>
    %112 = vector.multi_reduction <maximumf>, %111, %cst_37 [1] : vector<8x8xf32> to vector<8xf32>
    %113 = vector.shape_cast %112 : vector<8xf32> to vector<8x1xf32>
    %114 = vector.broadcast %113 : vector<8x1xf32> to vector<8x8xf32>
    %115 = arith.subf %111, %114 : vector<8x8xf32>
    %116 = math.exp %115 : vector<8x8xf32>
    %cst_38 = arith.constant dense<0.000000e+00> : vector<8xf32>
    %117 = vector.multi_reduction <add>, %116, %cst_38 [1] : vector<8x8xf32> to vector<8xf32>
    %118 = vector.shape_cast %117 : vector<8xf32> to vector<8x1xf32>
    %119 = tpu.reciprocal %118 {approx = true} : vector<8x1xf32> -> vector<8x1xf32>
    %120 = vector.broadcast %119 : vector<8x1xf32> to vector<8x8xf32>
    %121 = arith.mulf %116, %120 : vector<8x8xf32>
    %122 = vector.broadcast %105 : vector<1x128xf32> to vector<8x128xf32>
    %123 = arith.mulf %36, %122 : vector<8x128xf32>
    %cst_39 = arith.constant dense<0.000000e+00> : vector<8x128xf32>
    %124 = tpu.matmul %121, %123, %cst_39 {dimension_numbers = #tpu.dot_dimension_numbers<[1], [0], [0], [1], [0, 0, 1, 1], [], []>} : vector<8x8xf32>, vector<8x128xf32>, vector<8x128xf32> -> vector<8x128xf32>
    %125 = arith.addf %103, %124 : vector<8x128xf32>
    %126 = vector.extract_strided_slice %24 {offsets = [8, 0], sizes = [8, 128], strides = [1, 1]} : vector<16x128xf32> to vector<8x128xf32>
    %127 = vector.extract_strided_slice %32 {offsets = [8, 0], sizes = [8, 128], strides = [1, 1]} : vector<16x128xf32> to vector<8x128xf32>
    %128 = vector.extract_strided_slice %33 {offsets = [8, 0], sizes = [8, 128], strides = [1, 1]} : vector<16x128xf32> to vector<8x128xf32>
    %cst_40 = arith.constant 0.000000e+00 : f32
    %129 = vector.broadcast %cst_40 : f32 to vector<8x128xf32>
    %130 = vector.extract_strided_slice %8 {offsets = [0, 0, 0], sizes = [1, 1, 128], strides = [1, 1, 1]} : vector<4x1x128xf32> to vector<1x1x128xf32>
    %131 = vector.shape_cast %130 : vector<1x1x128xf32> to vector<1x128xf32>
    %132 = vector.broadcast %131 : vector<1x128xf32> to vector<8x128xf32>
    %133 = arith.mulf %126, %132 : vector<8x128xf32>
    %cst_41 = arith.constant dense<0.000000e+00> : vector<8x8xf32>
    %134 = tpu.matmul %133, %127, %cst_41 {dimension_numbers = #tpu.dot_dimension_numbers<[1], [1], [0], [0], [0, 0, 1, 0], [], []>} : vector<8x128xf32>, vector<8x128xf32>, vector<8x8xf32> -> vector<8x8xf32>
    %135 = vector.extract_strided_slice %7 {offsets = [1, 0, 0, 0], sizes = [1, 1, 8, 8], strides = [1, 1, 1, 1]} : vector<2x4x8x8xf32> to vector<1x1x8x8xf32>
    %136 = vector.shape_cast %135 : vector<1x1x8x8xf32> to vector<8x8xf32>
    %137 = arith.addf %134, %136 : vector<8x8xf32>
    %cst_42 = arith.constant dense<0xFF800000> : vector<8xf32>
    %138 = vector.multi_reduction <maximumf>, %137, %cst_42 [1] : vector<8x8xf32> to vector<8xf32>
    %139 = vector.shape_cast %138 : vector<8xf32> to vector<8x1xf32>
    %140 = vector.broadcast %139 : vector<8x1xf32> to vector<8x8xf32>
    %141 = arith.subf %137, %140 : vector<8x8xf32>
    %142 = math.exp %141 : vector<8x8xf32>
    %cst_43 = arith.constant dense<0.000000e+00> : vector<8xf32>
    %143 = vector.multi_reduction <add>, %142, %cst_43 [1] : vector<8x8xf32> to vector<8xf32>
    %144 = vector.shape_cast %143 : vector<8xf32> to vector<8x1xf32>
    %145 = tpu.reciprocal %144 {approx = true} : vector<8x1xf32> -> vector<8x1xf32>
    %146 = vector.broadcast %145 : vector<8x1xf32> to vector<8x8xf32>
    %147 = arith.mulf %142, %146 : vector<8x8xf32>
    %148 = vector.broadcast %131 : vector<1x128xf32> to vector<8x128xf32>
    %149 = arith.mulf %128, %148 : vector<8x128xf32>
    %cst_44 = arith.constant dense<0.000000e+00> : vector<8x128xf32>
    %150 = tpu.matmul %147, %149, %cst_44 {dimension_numbers = #tpu.dot_dimension_numbers<[1], [0], [0], [1], [0, 0, 1, 1], [], []>} : vector<8x8xf32>, vector<8x128xf32>, vector<8x128xf32> -> vector<8x128xf32>
    %151 = arith.addf %129, %150 : vector<8x128xf32>
    %152 = vector.extract_strided_slice %8 {offsets = [1, 0, 0], sizes = [1, 1, 128], strides = [1, 1, 1]} : vector<4x1x128xf32> to vector<1x1x128xf32>
    %153 = vector.shape_cast %152 : vector<1x1x128xf32> to vector<1x128xf32>
    %154 = vector.broadcast %153 : vector<1x128xf32> to vector<8x128xf32>
    %155 = arith.mulf %126, %154 : vector<8x128xf32>
    %cst_45 = arith.constant dense<0.000000e+00> : vector<8x8xf32>
    %156 = tpu.matmul %155, %127, %cst_45 {dimension_numbers = #tpu.dot_dimension_numbers<[1], [1], [0], [0], [0, 0, 1, 0], [], []>} : vector<8x128xf32>, vector<8x128xf32>, vector<8x8xf32> -> vector<8x8xf32>
    %157 = vector.extract_strided_slice %7 {offsets = [1, 1, 0, 0], sizes = [1, 1, 8, 8], strides = [1, 1, 1, 1]} : vector<2x4x8x8xf32> to vector<1x1x8x8xf32>
    %158 = vector.shape_cast %157 : vector<1x1x8x8xf32> to vector<8x8xf32>
    %159 = arith.addf %156, %158 : vector<8x8xf32>
    %cst_46 = arith.constant dense<0xFF800000> : vector<8xf32>
    %160 = vector.multi_reduction <maximumf>, %159, %cst_46 [1] : vector<8x8xf32> to vector<8xf32>
    %161 = vector.shape_cast %160 : vector<8xf32> to vector<8x1xf32>
    %162 = vector.broadcast %161 : vector<8x1xf32> to vector<8x8xf32>
    %163 = arith.subf %159, %162 : vector<8x8xf32>
    %164 = math.exp %163 : vector<8x8xf32>
    %cst_47 = arith.constant dense<0.000000e+00> : vector<8xf32>
    %165 = vector.multi_reduction <add>, %164, %cst_47 [1] : vector<8x8xf32> to vector<8xf32>
    %166 = vector.shape_cast %165 : vector<8xf32> to vector<8x1xf32>
    %167 = tpu.reciprocal %166 {approx = true} : vector<8x1xf32> -> vector<8x1xf32>
    %168 = vector.broadcast %167 : vector<8x1xf32> to vector<8x8xf32>
    %169 = arith.mulf %164, %168 : vector<8x8xf32>
    %170 = vector.broadcast %153 : vector<1x128xf32> to vector<8x128xf32>
    %171 = arith.mulf %128, %170 : vector<8x128xf32>
    %cst_48 = arith.constant dense<0.000000e+00> : vector<8x128xf32>
    %172 = tpu.matmul %169, %171, %cst_48 {dimension_numbers = #tpu.dot_dimension_numbers<[1], [0], [0], [1], [0, 0, 1, 1], [], []>} : vector<8x8xf32>, vector<8x128xf32>, vector<8x128xf32> -> vector<8x128xf32>
    %173 = arith.addf %151, %172 : vector<8x128xf32>
    %174 = vector.extract_strided_slice %8 {offsets = [2, 0, 0], sizes = [1, 1, 128], strides = [1, 1, 1]} : vector<4x1x128xf32> to vector<1x1x128xf32>
    %175 = vector.shape_cast %174 : vector<1x1x128xf32> to vector<1x128xf32>
    %176 = vector.broadcast %175 : vector<1x128xf32> to vector<8x128xf32>
    %177 = arith.mulf %126, %176 : vector<8x128xf32>
    %cst_49 = arith.constant dense<0.000000e+00> : vector<8x8xf32>
    %178 = tpu.matmul %177, %127, %cst_49 {dimension_numbers = #tpu.dot_dimension_numbers<[1], [1], [0], [0], [0, 0, 1, 0], [], []>} : vector<8x128xf32>, vector<8x128xf32>, vector<8x8xf32> -> vector<8x8xf32>
    %179 = vector.extract_strided_slice %7 {offsets = [1, 2, 0, 0], sizes = [1, 1, 8, 8], strides = [1, 1, 1, 1]} : vector<2x4x8x8xf32> to vector<1x1x8x8xf32>
    %180 = vector.shape_cast %179 : vector<1x1x8x8xf32> to vector<8x8xf32>
    %181 = arith.addf %178, %180 : vector<8x8xf32>
    %cst_50 = arith.constant dense<0xFF800000> : vector<8xf32>
    %182 = vector.multi_reduction <maximumf>, %181, %cst_50 [1] : vector<8x8xf32> to vector<8xf32>
    %183 = vector.shape_cast %182 : vector<8xf32> to vector<8x1xf32>
    %184 = vector.broadcast %183 : vector<8x1xf32> to vector<8x8xf32>
    %185 = arith.subf %181, %184 : vector<8x8xf32>
    %186 = math.exp %185 : vector<8x8xf32>
    %cst_51 = arith.constant dense<0.000000e+00> : vector<8xf32>
    %187 = vector.multi_reduction <add>, %186, %cst_51 [1] : vector<8x8xf32> to vector<8xf32>
    %188 = vector.shape_cast %187 : vector<8xf32> to vector<8x1xf32>
    %189 = tpu.reciprocal %188 {approx = true} : vector<8x1xf32> -> vector<8x1xf32>
    %190 = vector.broadcast %189 : vector<8x1xf32> to vector<8x8xf32>
    %191 = arith.mulf %186, %190 : vector<8x8xf32>
    %192 = vector.broadcast %175 : vector<1x128xf32> to vector<8x128xf32>
    %193 = arith.mulf %128, %192 : vector<8x128xf32>
    %cst_52 = arith.constant dense<0.000000e+00> : vector<8x128xf32>
    %194 = tpu.matmul %191, %193, %cst_52 {dimension_numbers = #tpu.dot_dimension_numbers<[1], [0], [0], [1], [0, 0, 1, 1], [], []>} : vector<8x8xf32>, vector<8x128xf32>, vector<8x128xf32> -> vector<8x128xf32>
    %195 = arith.addf %173, %194 : vector<8x128xf32>
    %196 = vector.extract_strided_slice %8 {offsets = [3, 0, 0], sizes = [1, 1, 128], strides = [1, 1, 1]} : vector<4x1x128xf32> to vector<1x1x128xf32>
    %197 = vector.shape_cast %196 : vector<1x1x128xf32> to vector<1x128xf32>
    %198 = vector.broadcast %197 : vector<1x128xf32> to vector<8x128xf32>
    %199 = arith.mulf %126, %198 : vector<8x128xf32>
    %cst_53 = arith.constant dense<0.000000e+00> : vector<8x8xf32>
    %200 = tpu.matmul %199, %127, %cst_53 {dimension_numbers = #tpu.dot_dimension_numbers<[1], [1], [0], [0], [0, 0, 1, 0], [], []>} : vector<8x128xf32>, vector<8x128xf32>, vector<8x8xf32> -> vector<8x8xf32>
    %201 = vector.extract_strided_slice %7 {offsets = [1, 3, 0, 0], sizes = [1, 1, 8, 8], strides = [1, 1, 1, 1]} : vector<2x4x8x8xf32> to vector<1x1x8x8xf32>
    %202 = vector.shape_cast %201 : vector<1x1x8x8xf32> to vector<8x8xf32>
    %203 = arith.addf %200, %202 : vector<8x8xf32>
    %cst_54 = arith.constant dense<0xFF800000> : vector<8xf32>
    %204 = vector.multi_reduction <maximumf>, %203, %cst_54 [1] : vector<8x8xf32> to vector<8xf32>
    %205 = vector.shape_cast %204 : vector<8xf32> to vector<8x1xf32>
    %206 = vector.broadcast %205 : vector<8x1xf32> to vector<8x8xf32>
    %207 = arith.subf %203, %206 : vector<8x8xf32>
    %208 = math.exp %207 : vector<8x8xf32>
    %cst_55 = arith.constant dense<0.000000e+00> : vector<8xf32>
    %209 = vector.multi_reduction <add>, %208, %cst_55 [1] : vector<8x8xf32> to vector<8xf32>
    %210 = vector.shape_cast %209 : vector<8xf32> to vector<8x1xf32>
    %211 = tpu.reciprocal %210 {approx = true} : vector<8x1xf32> -> vector<8x1xf32>
    %212 = vector.broadcast %211 : vector<8x1xf32> to vector<8x8xf32>
    %213 = arith.mulf %208, %212 : vector<8x8xf32>
    %214 = vector.broadcast %197 : vector<1x128xf32> to vector<8x128xf32>
    %215 = arith.mulf %128, %214 : vector<8x128xf32>
    %cst_56 = arith.constant dense<0.000000e+00> : vector<8x128xf32>
    %216 = tpu.matmul %213, %215, %cst_56 {dimension_numbers = #tpu.dot_dimension_numbers<[1], [0], [0], [1], [0, 0, 1, 1], [], []>} : vector<8x8xf32>, vector<8x128xf32>, vector<8x128xf32> -> vector<8x128xf32>
    %217 = arith.addf %195, %216 : vector<8x128xf32>
    %218 = tpu.concatenate %125, %217 in 0 : vector<8x128xf32>, vector<8x128xf32> -> vector<16x128xf32>
    %219 = arith.truncf %218 : vector<16x128xf32> to vector<16x128xbf16>
    %c0_57 = arith.constant 0 : index
    %c0_58 = arith.constant 0 : index
    %c0_59 = arith.constant 0 : index
    %220 = vector.load %arg10[%c0_57, %c0_58, %c0_59] : memref<1x128x128xbf16, #tpu.memory_space<vmem>>, vector<1x128x128xbf16>
    %221 = vector.shape_cast %220 : vector<1x128x128xbf16> to vector<128x128xbf16>
    %cst_60 = arith.constant dense<0.000000e+00> : vector<16x128xf32>
    %222 = tpu.matmul %219, %221, %cst_60 {dimension_numbers = #tpu.dot_dimension_numbers<[1], [0], [0], [1], [0, 0, 1, 1], [], []>} : vector<16x128xbf16>, vector<128x128xbf16>, vector<16x128xf32> -> vector<16x128xf32>
    %c0_61 = arith.constant 0 : index
    %c0_62 = arith.constant 0 : index
    %c0_63 = arith.constant 0 : index
    %223 = vector.load %arg11[%c0_61, %c0_62, %c0_63] : memref<1x1x128xf32, #tpu.memory_space<vmem>>, vector<1x1x128xf32>
    %224 = vector.shape_cast %223 : vector<1x1x128xf32> to vector<1x128xf32>
    %225 = vector.broadcast %224 : vector<1x128xf32> to vector<16x128xf32>
    %226 = arith.addf %222, %225 : vector<16x128xf32>
    %227 = arith.addf %3, %226 : vector<16x128xf32>
    %c0_64 = arith.constant 0 : index
    %c0_65 = arith.constant 0 : index
    %c0_66 = arith.constant 0 : index
    %228 = vector.load %arg12[%c0_64, %c0_65, %c0_66] : memref<1x1x128xf32, #tpu.memory_space<vmem>>, vector<1x1x128xf32>
    %229 = vector.shape_cast %228 : vector<1x1x128xf32> to vector<1x128xf32>
    %c0_67 = arith.constant 0 : index
    %c0_68 = arith.constant 0 : index
    %c0_69 = arith.constant 0 : index
    %230 = vector.load %arg13[%c0_67, %c0_68, %c0_69] : memref<1x1x128xf32, #tpu.memory_space<vmem>>, vector<1x1x128xf32>
    %231 = vector.shape_cast %230 : vector<1x1x128xf32> to vector<1x128xf32>
    %cst_70 = arith.constant dense<0.000000e+00> : vector<16xf32>
    %232 = vector.multi_reduction <add>, %227, %cst_70 [1] : vector<16x128xf32> to vector<16xf32>
    %233 = vector.shape_cast %232 : vector<16xf32> to vector<16x1xf32>
    %cst_71 = arith.constant 1.280000e+02 : f32
    %234 = vector.broadcast %cst_71 : f32 to vector<16x1xf32>
    %235 = arith.divf %233, %234 : vector<16x1xf32>
    %236 = vector.broadcast %235 : vector<16x1xf32> to vector<16x128xf32>
    %237 = arith.subf %227, %236 : vector<16x128xf32>
    %238 = arith.mulf %237, %237 : vector<16x128xf32>
    %cst_72 = arith.constant dense<0.000000e+00> : vector<16xf32>
    %239 = vector.multi_reduction <add>, %238, %cst_72 [1] : vector<16x128xf32> to vector<16xf32>
    %240 = vector.shape_cast %239 : vector<16xf32> to vector<16x1xf32>
    %cst_73 = arith.constant 1.280000e+02 : f32
    %241 = vector.broadcast %cst_73 : f32 to vector<16x1xf32>
    %242 = arith.divf %240, %241 : vector<16x1xf32>
    %cst_74 = arith.constant 9.99999974E-6 : f32
    %243 = vector.broadcast %cst_74 : f32 to vector<16x1xf32>
    %244 = arith.addf %242, %243 : vector<16x1xf32>
    %245 = math.rsqrt %244 : vector<16x1xf32>
    %246 = vector.broadcast %245 : vector<16x1xf32> to vector<16x128xf32>
    %247 = arith.mulf %237, %246 : vector<16x128xf32>
    %248 = vector.broadcast %229 : vector<1x128xf32> to vector<16x128xf32>
    %249 = arith.mulf %247, %248 : vector<16x128xf32>
    %250 = vector.broadcast %231 : vector<1x128xf32> to vector<16x128xf32>
    %251 = arith.addf %249, %250 : vector<16x128xf32>
    %252 = arith.truncf %251 : vector<16x128xf32> to vector<16x128xbf16>
    %c0_75 = arith.constant 0 : index
    %c0_76 = arith.constant 0 : index
    %c0_77 = arith.constant 0 : index
    %253 = vector.load %arg14[%c0_75, %c0_76, %c0_77] : memref<1x128x256xbf16, #tpu.memory_space<vmem>>, vector<1x128x256xbf16>
    %254 = vector.shape_cast %253 : vector<1x128x256xbf16> to vector<128x256xbf16>
    %cst_78 = arith.constant dense<0.000000e+00> : vector<16x256xf32>
    %255 = tpu.matmul %252, %254, %cst_78 {dimension_numbers = #tpu.dot_dimension_numbers<[1], [0], [0], [1], [0, 0, 1, 1], [], []>} : vector<16x128xbf16>, vector<128x256xbf16>, vector<16x256xf32> -> vector<16x256xf32>
    %c0_79 = arith.constant 0 : index
    %c0_80 = arith.constant 0 : index
    %c0_81 = arith.constant 0 : index
    %256 = vector.load %arg15[%c0_79, %c0_80, %c0_81] : memref<1x1x256xf32, #tpu.memory_space<vmem>>, vector<1x1x256xf32>
    %257 = vector.shape_cast %256 : vector<1x1x256xf32> to vector<1x256xf32>
    %258 = vector.broadcast %257 : vector<1x256xf32> to vector<16x256xf32>
    %259 = arith.addf %255, %258 : vector<16x256xf32>
    %cst_82 = arith.constant 0.000000e+00 : f32
    %260 = vector.broadcast %cst_82 : f32 to vector<16x256xf32>
    %261 = arith.maximumf %259, %260 : vector<16x256xf32>
    %262 = arith.truncf %261 : vector<16x256xf32> to vector<16x256xbf16>
    %c0_83 = arith.constant 0 : index
    %c0_84 = arith.constant 0 : index
    %c0_85 = arith.constant 0 : index
    %263 = vector.load %arg16[%c0_83, %c0_84, %c0_85] : memref<1x256x128xbf16, #tpu.memory_space<vmem>>, vector<1x256x128xbf16>
    %264 = vector.shape_cast %263 : vector<1x256x128xbf16> to vector<256x128xbf16>
    %cst_86 = arith.constant dense<0.000000e+00> : vector<16x128xf32>
    %265 = tpu.matmul %262, %264, %cst_86 {dimension_numbers = #tpu.dot_dimension_numbers<[1], [0], [0], [1], [0, 0, 1, 1], [], []>} : vector<16x256xbf16>, vector<256x128xbf16>, vector<16x128xf32> -> vector<16x128xf32>
    %c0_87 = arith.constant 0 : index
    %c0_88 = arith.constant 0 : index
    %c0_89 = arith.constant 0 : index
    %266 = vector.load %arg17[%c0_87, %c0_88, %c0_89] : memref<1x1x128xf32, #tpu.memory_space<vmem>>, vector<1x1x128xf32>
    %267 = vector.shape_cast %266 : vector<1x1x128xf32> to vector<1x128xf32>
    %268 = vector.broadcast %267 : vector<1x128xf32> to vector<16x128xf32>
    %269 = arith.addf %265, %268 : vector<16x128xf32>
    %270 = arith.addf %251, %269 : vector<16x128xf32>
    %c0_90 = arith.constant 0 : index
    %c0_91 = arith.constant 0 : index
    %c0_92 = arith.constant 0 : index
    %271 = vector.load %arg18[%c0_90, %c0_91, %c0_92] : memref<1x1x128xf32, #tpu.memory_space<vmem>>, vector<1x1x128xf32>
    %272 = vector.shape_cast %271 : vector<1x1x128xf32> to vector<1x128xf32>
    %c0_93 = arith.constant 0 : index
    %c0_94 = arith.constant 0 : index
    %c0_95 = arith.constant 0 : index
    %273 = vector.load %arg19[%c0_93, %c0_94, %c0_95] : memref<1x1x128xf32, #tpu.memory_space<vmem>>, vector<1x1x128xf32>
    %274 = vector.shape_cast %273 : vector<1x1x128xf32> to vector<1x128xf32>
    %cst_96 = arith.constant dense<0.000000e+00> : vector<16xf32>
    %275 = vector.multi_reduction <add>, %270, %cst_96 [1] : vector<16x128xf32> to vector<16xf32>
    %276 = vector.shape_cast %275 : vector<16xf32> to vector<16x1xf32>
    %cst_97 = arith.constant 1.280000e+02 : f32
    %277 = vector.broadcast %cst_97 : f32 to vector<16x1xf32>
    %278 = arith.divf %276, %277 : vector<16x1xf32>
    %279 = vector.broadcast %278 : vector<16x1xf32> to vector<16x128xf32>
    %280 = arith.subf %270, %279 : vector<16x128xf32>
    %281 = arith.mulf %280, %280 : vector<16x128xf32>
    %cst_98 = arith.constant dense<0.000000e+00> : vector<16xf32>
    %282 = vector.multi_reduction <add>, %281, %cst_98 [1] : vector<16x128xf32> to vector<16xf32>
    %283 = vector.shape_cast %282 : vector<16xf32> to vector<16x1xf32>
    %cst_99 = arith.constant 1.280000e+02 : f32
    %284 = vector.broadcast %cst_99 : f32 to vector<16x1xf32>
    %285 = arith.divf %283, %284 : vector<16x1xf32>
    %cst_100 = arith.constant 9.99999974E-6 : f32
    %286 = vector.broadcast %cst_100 : f32 to vector<16x1xf32>
    %287 = arith.addf %285, %286 : vector<16x1xf32>
    %288 = math.rsqrt %287 : vector<16x1xf32>
    %289 = vector.broadcast %288 : vector<16x1xf32> to vector<16x128xf32>
    %290 = arith.mulf %280, %289 : vector<16x128xf32>
    %291 = vector.broadcast %272 : vector<1x128xf32> to vector<16x128xf32>
    %292 = arith.mulf %290, %291 : vector<16x128xf32>
    %293 = vector.broadcast %274 : vector<1x128xf32> to vector<16x128xf32>
    %294 = arith.addf %292, %293 : vector<16x128xf32>
    %c0_101 = arith.constant 0 : index
    %c0_102 = arith.constant 0 : index
    %295 = vector.load %arg21[%c0_101, %c0_102] : memref<16x128xf32, #tpu.memory_space<vmem>>, vector<16x128xf32>
    tpu.vector_store %arg21[%c0_101, %c0_102], %294 {strides = array<i32>} : memref<16x128xf32, #tpu.memory_space<vmem>>, vector<16x128xf32>,
    %c1_i32_103 = arith.constant 1 : i32
    %296 = arith.cmpi eq, %arg1, %c1_i32_103 : i32
    %297 = arith.extui %296 : i1 to i32
    %c0_i32_104 = arith.constant 0 : i32
    %298 = arith.cmpi ne, %297, %c0_i32_104 : i32
    scf.if %298 {
      %c0_105 = arith.constant 0 : index
      %c0_106 = arith.constant 0 : index
      %299 = vector.load %arg20[%c0_105, %c0_106] : memref<16x128xf32, #tpu.memory_space<vmem>>, vector<16x128xf32>
      tpu.vector_store %arg20[%c0_105, %c0_106], %294 {strides = array<i32>} : memref<16x128xf32, #tpu.memory_space<vmem>>, vector<16x128xf32>,
    } else {
    }
    return
  }
  func.func @transform_0(%arg0: i32, %arg1: i32) -> (i32, i32) {
    %c0_i32 = arith.constant 0 : i32
    %c0_i32_0 = arith.constant 0 : i32
    return %arg0, %c0_i32 : i32, i32
  }
  func.func @transform_1(%arg0: i32, %arg1: i32) -> (i32, i32) {
    %c0_i32 = arith.constant 0 : i32
    %c0_i32_0 = arith.constant 0 : i32
    return %arg0, %c0_i32 : i32, i32
  }
  func.func @transform_2(%arg0: i32, %arg1: i32) -> (i32, i32) {
    %c0_i32 = arith.constant 0 : i32
    %c0_i32_0 = arith.constant 0 : i32
    return %arg0, %c0_i32 : i32, i32
  }
  func.func @transform_3(%arg0: i32, %arg1: i32) -> (i32, i32) {
    %c0_i32 = arith.constant 0 : i32
    %c0_i32_0 = arith.constant 0 : i32
    return %arg0, %c0_i32 : i32, i32
  }
  func.func @transform_4(%arg0: i32, %arg1: i32) -> (i32, i32, i32, i32) {
    %c0_i32 = arith.constant 0 : i32
    %c0_i32_0 = arith.constant 0 : i32
    %c0_i32_1 = arith.constant 0 : i32
    %c0_i32_2 = arith.constant 0 : i32
    return %arg0, %c0_i32, %c0_i32_0, %c0_i32_1 : i32, i32, i32, i32
  }
  func.func @transform_5(%arg0: i32, %arg1: i32) -> (i32, i32, i32) {
    %c0_i32 = arith.constant 0 : i32
    %c0_i32_0 = arith.constant 0 : i32
    %c0_i32_1 = arith.constant 0 : i32
    %c0_i32_2 = arith.constant 0 : i32
    return %c0_i32, %c0_i32_0, %c0_i32_1 : i32, i32, i32
  }
  func.func @transform_6(%arg0: i32, %arg1: i32) -> (i32, i32, i32) {
    %c0_i32 = arith.constant 0 : i32
    %c0_i32_0 = arith.constant 0 : i32
    %c0_i32_1 = arith.constant 0 : i32
    return %arg1, %c0_i32, %c0_i32_0 : i32, i32, i32
  }
  func.func @transform_7(%arg0: i32, %arg1: i32) -> (i32, i32, i32) {
    %c0_i32 = arith.constant 0 : i32
    %c0_i32_0 = arith.constant 0 : i32
    %c0_i32_1 = arith.constant 0 : i32
    return %arg1, %c0_i32, %c0_i32_0 : i32, i32, i32
  }
  func.func @transform_8(%arg0: i32, %arg1: i32) -> (i32, i32, i32) {
    %c0_i32 = arith.constant 0 : i32
    %c0_i32_0 = arith.constant 0 : i32
    %c0_i32_1 = arith.constant 0 : i32
    return %arg1, %c0_i32, %c0_i32_0 : i32, i32, i32
  }
  func.func @transform_9(%arg0: i32, %arg1: i32) -> (i32, i32, i32) {
    %c0_i32 = arith.constant 0 : i32
    %c0_i32_0 = arith.constant 0 : i32
    %c0_i32_1 = arith.constant 0 : i32
    return %arg1, %c0_i32, %c0_i32_0 : i32, i32, i32
  }
  func.func @transform_10(%arg0: i32, %arg1: i32) -> (i32, i32, i32) {
    %c0_i32 = arith.constant 0 : i32
    %c0_i32_0 = arith.constant 0 : i32
    %c0_i32_1 = arith.constant 0 : i32
    return %arg1, %c0_i32, %c0_i32_0 : i32, i32, i32
  }
  func.func @transform_11(%arg0: i32, %arg1: i32) -> (i32, i32, i32) {
    %c0_i32 = arith.constant 0 : i32
    %c0_i32_0 = arith.constant 0 : i32
    %c0_i32_1 = arith.constant 0 : i32
    return %arg1, %c0_i32, %c0_i32_0 : i32, i32, i32
  }
  func.func @transform_12(%arg0: i32, %arg1: i32) -> (i32, i32, i32) {
    %c0_i32 = arith.constant 0 : i32
    %c0_i32_0 = arith.constant 0 : i32
    %c0_i32_1 = arith.constant 0 : i32
    return %arg1, %c0_i32, %c0_i32_0 : i32, i32, i32
  }
  func.func @transform_13(%arg0: i32, %arg1: i32) -> (i32, i32, i32) {
    %c0_i32 = arith.constant 0 : i32
    %c0_i32_0 = arith.constant 0 : i32
    %c0_i32_1 = arith.constant 0 : i32
    return %arg1, %c0_i32, %c0_i32_0 : i32, i32, i32
  }
  func.func @transform_14(%arg0: i32, %arg1: i32) -> (i32, i32, i32) {
    %c0_i32 = arith.constant 0 : i32
    %c0_i32_0 = arith.constant 0 : i32
    %c0_i32_1 = arith.constant 0 : i32
    return %arg1, %c0_i32, %c0_i32_0 : i32, i32, i32
  }
  func.func @transform_15(%arg0: i32, %arg1: i32) -> (i32, i32, i32) {
    %c0_i32 = arith.constant 0 : i32
    %c0_i32_0 = arith.constant 0 : i32
    %c0_i32_1 = arith.constant 0 : i32
    return %arg1, %c0_i32, %c0_i32_0 : i32, i32, i32
  }
  func.func @transform_16(%arg0: i32, %arg1: i32) -> (i32, i32, i32) {
    %c0_i32 = arith.constant 0 : i32
    %c0_i32_0 = arith.constant 0 : i32
    %c0_i32_1 = arith.constant 0 : i32
    return %arg1, %c0_i32, %c0_i32_0 : i32, i32, i32
  }
  func.func @transform_17(%arg0: i32, %arg1: i32) -> (i32, i32, i32) {
    %c0_i32 = arith.constant 0 : i32
    %c0_i32_0 = arith.constant 0 : i32
    %c0_i32_1 = arith.constant 0 : i32
    return %arg1, %c0_i32, %c0_i32_0 : i32, i32, i32
  }
  func.func @transform_18(%arg0: i32, %arg1: i32) -> (i32, i32) {
    %c0_i32 = arith.constant 0 : i32
    %c0_i32_0 = arith.constant 0 : i32
    return %arg0, %c0_i32 : i32, i32
  }
}

</mosaic_0001>

<bundles_post_ra>
// kernel: tpu_custom_call.1
= control target key start
LH: loop header
LB: loop body
LE: loop exit
PB: predicated region body
PF: predicated region fallthrough
CT: control target
= control target key end

     0   :  { %s5204_s0 = inlined_call_operand.hbm [shape: f32[16,128], index: 0, kind: input, shape index: {}]   ;;  %s5205_s1 = inlined_call_operand.hbm [shape: f32[16,128], index: 1, kind: input, shape index: {}]   ;;  %s5206_s2 = inlined_call_operand.hbm [shape: f32[16,128], index: 2, kind: input, shape index: {}]   ;;  %s5207_s3 = inlined_call_operand.hbm [shape: f32[16,128], index: 3, kind: input, shape index: {}]   ;;  %s5208_s4 = inlined_call_operand.hbm [shape: f32[2,4,8,8], index: 4, kind: input, shape index: {}]   ;;  %s5209_s5 = inlined_call_operand.vmem [shape: f32[4,1,128], index: 5, kind: input, shape index: {}]   ;;  %s5210_s6 = inlined_call_operand.hbm [shape: bf16[2,128,384], index: 6, kind: input, shape index: {}]   ;;  %s5211_s7 = inlined_call_operand.vmem [shape: f32[2,1,384], index: 7, kind: input, shape index: {}]   ;;  %s5212_s8 = inlined_call_operand.hbm [shape: bf16[2,128,128], index: 8, kind: input, shape index: {}]   ;;  %s5213_s9 = inlined_call_operand.vmem [shape: f32[2,1,128], index: 9, kind: input, shape index: {}]   ;;  %s5214_s10 = inlined_call_operand.vmem [shape: f32[2,1,128], index: 10, kind: input, shape index: {}]   ;;  %s5215_s11 = inlined_call_operand.vmem [shape: f32[2,1,128], index: 11, kind: input, shape index: {}]   ;;  %s5216_s12 = inlined_call_operand.hbm [shape: bf16[2,128,256], index: 12, kind: input, shape index: {}]   ;;  %s5217_s13 = inlined_call_operand.vmem [shape: f32[2,1,256], index: 13, kind: input, shape index: {}]   ;;  %s5218_s14 = inlined_call_operand.hbm [shape: bf16[2,256,128], index: 14, kind: input, shape index: {}]   ;;  %s5219_s15 = inlined_call_operand.vmem [shape: f32[2,1,128], index: 15, kind: input, shape index: {}]   ;;  %s5220_s16 = inlined_call_operand.vmem [shape: f32[2,1,128], index: 16, kind: input, shape index: {}]   ;;  %s5221_s17 = inlined_call_operand.vmem [shape: f32[2,1,128], index: 17, kind: input, shape index: {}]   ;;  %s5222_s18 = inlined_call_operand.hbm [shape: f32[16,128], index: 18, kind: output, shape index: {}]  }
   0x1   :  { %5258 = sst [smem:[#allocation34_spill]] %s5204_s0 }
   0x2   :  { %5259 = sst [smem:[#allocation35_spill]] %s5205_s1 }
   0x3   :  { %5260 = sst [smem:[#allocation36_spill]] %s5206_s2 }
   0x4   :  { %5261 = sst [smem:[#allocation37_spill]] %s5207_s3 }
   0x5   :  { %5262 = sst [smem:[#allocation38_spill]] %s5208_s4 }
   0x6   :  { %5263 = sst [smem:[#allocation39_spill]] %s5209_s5 }
   0x7   :  { %5264 = sst [smem:[#allocation40_spill]] %s5210_s6 }
   0x8   :  { %5265 = sst [smem:[#allocation41_spill]] %s5211_s7 }
   0x9   :  { %5266 = sst [smem:[#allocation42_spill]] %s5213_s9 }
   0xa   :  { %5267 = sst [smem:[#allocation43_spill]] %s5214_s10 }
   0xb   :  { %5268 = sst [smem:[#allocation44_spill]] %s5215_s11 }
   0xc   :  { %5269 = sst [smem:[#allocation45_spill]] %s5216_s12 }
   0xd   :  { %5270 = sst [smem:[#allocation46_spill]] %s5217_s13 }
   0xe   :  { %5271 = sst [smem:[#allocation47_spill]] %s5219_s15 }
   0xf   :  { %5272 = sst [smem:[#allocation48_spill]] %s5220_s16 }
  0x10   :  { %5273 = sst [smem:[#allocation49_spill]] %s5221_s17 }
  0x11   :  { %5274 = sst [smem:[#allocation50_spill]] %s5222_s18 }
  0x12   :  { %23 = vsyncpa [#allocation4], 0 }
  0x13   :  { %24 = vsyncpa [#allocation7], 0 }
  0x14   :  { %25 = vsyncpa [#allocation10], 0 }
  0x15   :  { %26 = vsyncpa [#allocation13], 0 }
  0x16   :  { %28 = vsyncpa [#allocation13 + $0x1], 0 }
  0x17   :  { %29 = vsyncpa [#allocation16], 0 }
  0x18   :  { %31 = vsyncpa [#allocation16 + $0x1], 0 }
  0x19   :  { %32 = vsyncpa [#allocation5], 0  ;;  %s4433_s27 = smov 0   ;;  %s4435_s28 = smov 0  }
  0x1a   :  { %s4437_s29 = smov 0   ;;  %s4439_s30 = smov 0  }
  0x1b   :  { %s4441_s0 = smov 0   ;;  %s4443_s19 = smov 0  }
  0x1c LB: > { %5275 = sst [smem:[#allocation25_spill]] %s4297_s28  ;;  %s4464_s1 = sadd.s32 4294967295, %s4313_s19   ;;  %s4313_s19 = sphi %s4443_s19, %s38_s19   ;;  %s4309_s0 = sphi %s4441_s0, %s5345_s0   ;;  %s4305_s30 = sphi %s4439_s30, %s5344_s30   ;;  %s4301_s29 = sphi %s4437_s29, %s5342_s29   ;;  %s4297_s28 = sphi %s4435_s28, %s5341_s28   ;;  %s4293_s27 = sphi %s4433_s27, %s5340_s27  }
  0x1d   : > { %5276 = sst [smem:[#allocation26_spill]] %s4301_s29  ;;  %p3370_p0 = scmp.ge.s32.totalorder %s4313_s19, 1 }
  0x1e   : > { %5277 = sst [smem:[#allocation27_spill]] %s4305_s30  ;;  %p5228_p1 = scmp.eq.s32.totalorder %s4464_s1, 0 }
  0x1f   : > { %5278 = sst [smem:[#allocation28_spill]] %s4313_s19  ;;  %p544_p2 = scmp.lt.s32.totalorder %s4313_s19, 3 }
  0x20   : > { %5279 = sst [smem:[#allocation29_spill]] %s4464_s1  ;;  %s4315_s21 = smov [#allocation6]  }
  0x21   : > { %p4469_p3 = pnand %p3370_p0, %p544_p2  ;;  %s575_s22 = sshll.u32 %s4315_s21, 4  ;;  %s576_s22 = int_to_ptr.vmem [resolvable:$true] %s575_s22 }
  0x22   : > { %s4316_s2 = smov [#allocation9]   ;;  %s5283_s18 = sld [smem:[#allocation35_spill]] }
  0x23   : > { %s5280_s20 = scalar_select %p4469_p3, 1, 0 }
  0x24   : > { %p3728_p4 = pneg %p4469_p3  ;;  %s607_s23 = sshll.u32 %s4316_s2, 4  ;;  %s4481_s23 = int_to_ptr.vmem [resolvable:$true] %s607_s23 }
  0x25   : > { %5281 = sst [smem:[#allocation30_spill]] %s5280_s20 }
  0x26   : > { %p4477_p5 = pnand %p3728_p4, %p5228_p1 }
  0x28   : > { %s5282_s24 = scalar_select %p4477_p5, 1, 0 }
  0x29   : > { %s3957_s5 = scalar_lea.hbm %s5283_s18, 256  ;;  %p4491_p7 = pneg %p4477_p5 }
  0x2a   : > { %p3958_p6 = scmp.ne.s32.totalorder %s5283_s18, %s3957_s5  ;;  %p3964_p10 = scmp.lt.u32.totalorder %s3957_s5, %s5283_s18 }
  0x2b   : > { %s5284_s21 = scalar_select %p4491_p7, 1, 0 }
  0x2c   : > { %p3960_p8 = pnand %p4491_p7, %p3958_p6 }
  0x2e   : > { %p3961_p9 = pneg %p3960_p8 }
  0x30   : > { %p3966_p11 = pnand %p3964_p10, %p3961_p9 }
  0x32   : > { %3969 = shalt.err (!%p3966_p11)
}
  0x33   : > { %s3970_s25 = scalar_lea.vmem %s576_s22, 256  ;;  %p3978_p2 = scmp.lt.s32.totalorder %s576_s22, %s576_s22 }
  0x34   : > { %p3971_p12 = scmp.ne.s32.totalorder %s576_s22, %s3970_s25  ;;  %p3979_p4 = scmp.lt.s32.totalorder %s3970_s25, %s3970_s25 }
  0x36   : > { %p3973_p13 = pnand %p3971_p12, %p4491_p7  ;;  %p3980_p1 = por %p3979_p4, %p3978_p2 }
  0x38   : > { %p3974_p0 = pneg %p3973_p13 }
  0x3a   : > { %p3981_p3 = pnand %p3980_p1, %p3974_p0 }
  0x3c   : > { %3984 = shalt.err (!%p3981_p3)
}
  0x3d   : > { %s5230_s16 = smov 128   ;;  %s5232_s17 = smov 8  }
  0x3e   : > { %3734 = dma.hbm_to_vmem [thread:$0]  (!%p4477_p5), %s5283_s18, 256, %s576_s22, [#allocation7], %s5230_s16, %s5230_s16, %s5232_s17  }
  0x3f   : > { %s5285_s3 = sld [smem:[#allocation37_spill]] }
  0x45   : > { %s3985_s13 = scalar_lea.hbm %s5285_s3, 256 }
  0x46   : > { %p3986_p1 = scmp.ne.s32.totalorder %s5285_s3, %s3985_s13  ;;  %p3992_p8 = scmp.lt.u32.totalorder %s3985_s13, %s5285_s3 }
  0x48   : > { %p3988_p3 = pnand %p3986_p1, %p4491_p7 }
  0x4a   : > { %p3989_p6 = pneg %p3988_p3 }
  0x4c   : > { %p3994_p9 = pnand %p3992_p8, %p3989_p6 }
  0x4e   : > { %3997 = shalt.err (!%p3994_p9)
}
  0x4f   : > { %s3998_s22 = scalar_lea.vmem %s4481_s23, 256  ;;  %p4006_p13 = scmp.lt.s32.totalorder %s4481_s23, %s4481_s23 }
  0x50   : > { %p3999_p10 = scmp.ne.s32.totalorder %s4481_s23, %s3998_s22  ;;  %p4007_p0 = scmp.lt.s32.totalorder %s3998_s22, %s3998_s22 }
  0x52   : > { %p4001_p11 = pnand %p3999_p10, %p4491_p7  ;;  %p4008_p2 = por %p4007_p0, %p4006_p13 }
  0x54   : > { %p4002_p12 = pneg %p4001_p11 }
  0x56   : > { %p4009_p4 = pnand %p4008_p2, %p4002_p12 }
  0x58   : > { %4012 = shalt.err (!%p4009_p4)
}
  0x59   : > { %3740 = dma.hbm_to_vmem [thread:$0]  (!%p4477_p5), %s5285_s3, 256, %s4481_s23, [#allocation10], %s5230_s16, %s5230_s16, %s5232_s17  }
  0x5a   : > { %s47_s11 = sadd.s32 1, %s4309_s0  ;;  %s208_s13 = sadd.s32 1, %s4301_s29 }
  0x5b   : > { %p48_p1 = scmp.ge.s32.totalorder %s47_s11, 2  ;;  %p215_p3 = scmp.ne.s32.totalorder %s4301_s29, %s4297_s28 }
  0x5c   : > { %p216_p6 = scmp.eq.s32.totalorder %s4313_s19, 0  ;;  %p221_p8 = scmp.ne.s32.totalorder %s4297_s28, %s4293_s27 }
  0x5d   : > { %s5347_s11 = smov (%p48_p1, %s47_s11), 0  ;;  %p5287_p10 = scmp.eq.s32.totalorder %s4464_s1, 0 }
  0x5e   : > { %5286 = sst [smem:[#allocation31_spill]] %s5347_s11  ;;  %p217_p9 = por %p216_p6, %p215_p3 }
  0x5f   : > { %p4547_p11 = por %p5287_p10, %p221_p8  ;;  %s205_s15 = ssub.s32 %s4309_s0, %s5347_s11 }
  0x60   : > { %p3762_p12 = scmp.lt.s32.totalorder %s4313_s19, 2  ;;  %p206_p13 = scmp.eq.s32.totalorder %s205_s15, 0 }
  0x61   : > { %s5288_s5 = scalar_select %p4547_p11, 1, 0 }
  0x62   : > { %s5235_s23 = sand.u32 1, %s4313_s19   ;;  %s4556_s26 = sand.u32 1, %s4301_s29  }
  0x63   : > { %5289 = sst [smem:[#allocation32_spill]] %s5288_s5  ;;  %s3692_s27 = smul.u32 192, %s4556_s26 }
  0x64   : > { %s4559_s2 = scalar_select %p206_p13, %s4301_s29, %s208_s13  }
  0x65   : > { %p4562_p0 = pnand %p3762_p12, %p217_p9  ;;  %s3693_s22 = smul.u32 3072, %s4309_s0 }
  0x66   : > { %5290 = sst [smem:[#allocation33_spill]] %s4559_s2  ;;  %s5292_s6 = sld [smem:[#allocation40_spill]] }
  0x67   : > { %s5291_s25 = scalar_select %p4562_p0, 1, 0 }
  0x68   : > { %s645_s15 = scalar_lea.vmem [#allocation12], %s3692_s27  ;;  %s4576_s13 = scalar_lea.sflag [#allocation13], %s5235_s23 }
  0x69   : > { %s652_s17 = sshll.u32 %s645_s15, 4  ;;  %p4582_p4 = pneg %p4562_p0  ;;  %s4572_s17 = int_to_ptr.vmem [resolvable:$true] %s652_s17 }
  0x6b   : > { %s5293_s18 = scalar_select %p4582_p4, 1, 0 }
  0x6c   : > { %s4570_s16 = scalar_lea.hbm %s5292_s6, %s3693_s22  ;;  %s4018_s27 = scalar_lea.hbm %s5292_s6, 6144 }
  0x6d   : > { %s4013_s3 = scalar_lea.hbm %s4570_s16, 3072  ;;  %p4019_p6 = scmp.lt.u32.totalorder %s4570_s16, %s5292_s6 }
  0x6e   : > { %p4014_p2 = scmp.ne.s32.totalorder %s4570_s16, %s4013_s3  ;;  %p4020_p8 = scmp.lt.u32.totalorder %s4018_s27, %s4013_s3 }
  0x6f   : > { %p4022_p10 = scmp.lt.u32.totalorder %s4013_s3, %s4570_s16 }
  0x70   : > { %p4016_p1 = pnand %p4582_p4, %p4014_p2  ;;  %p4021_p9 = por %p4020_p8, %p4019_p6 }
  0x72   : > { %p4017_p3 = pneg %p4016_p1  ;;  %p4023_p12 = por %p4022_p10, %p4021_p9 }
  0x74   : > { %p4024_p13 = pnand %p4023_p12, %p4017_p3 }
  0x76   : > { %4027 = shalt.err (!%p4024_p13)
}
  0x77   : > { %s4028_s23 = scalar_lea.vmem %s4572_s17, 3072  ;;  %s4319_s22 = smov [#allocation12]  }
  0x78   : > { %p4029_p2 = scmp.ne.s32.totalorder %s4572_s17, %s4028_s23  ;;  %s4033_s7 = sshll.u32 %s4319_s22, 4  ;;  %s4034_s7 = int_to_ptr.vmem [resolvable:$false] %s4033_s7 }
  0x79   : > { %s4035_s10 = scalar_lea.vmem %s4034_s7, 6144  ;;  %p4036_p5 = scmp.lt.s32.totalorder %s4572_s17, %s4034_s7 }
  0x7a   : > { %p4031_p1 = pnand %p4029_p2, %p4582_p4  ;;  %p4037_p7 = scmp.lt.s32.totalorder %s4035_s10, %s4028_s23 }
  0x7c   : > { %p4032_p11 = pneg %p4031_p1  ;;  %p4038_p6 = por %p4037_p7, %p4036_p5 }
  0x7e   : > { %p4039_p8 = pnand %p4038_p6, %p4032_p11 }
  0x80   : > { %4042 = shalt.err (!%p4039_p8)
}
  0x81   : > { %s4320_s3 = smov 192   ;;  %s4321_s27 = smov 12  }
  0x82   : > { %3747 = dma.hbm_to_vmem [thread:$0]  (!%p4562_p0), %s4570_s16, 3072, %s4572_s17, %s4576_s13, %s4320_s3, %s4320_s3, %s4321_s27  }
  0x83   : > { %s3381_s15 = sshll.u32 %s4556_s26, 7  ;;  %s3486_s22 = sshll.u32 %s4309_s0, 11 }
  0x84   : > { %s5294_s12 = sld [smem:[#allocation45_spill]]  ;;  %s712_s6 = scalar_lea.vmem [#allocation15], %s3381_s15 }
  0x85   : > { %s719_s11 = sshll.u32 %s712_s6, 4  ;;  %s5295_s2 = sand.u32 1, %s4313_s19   ;;  %s4617_s11 = int_to_ptr.vmem [resolvable:$true] %s719_s11 }
  0x86   : > { %s4621_s29 = scalar_lea.sflag [#allocation16], %s5295_s2 }
  0x8a   : > { %s4613_s10 = scalar_lea.hbm %s5294_s12, %s3486_s22  ;;  %s4048_s27 = scalar_lea.hbm %s5294_s12, 4096 }
  0x8b   : > { %s4043_s16 = scalar_lea.hbm %s4613_s10, 2048  ;;  %p4049_p3 = scmp.lt.u32.totalorder %s4613_s10, %s5294_s12 }
  0x8c   : > { %p4044_p5 = scmp.ne.s32.totalorder %s4613_s10, %s4043_s16  ;;  %p4050_p9 = scmp.lt.u32.totalorder %s4048_s27, %s4043_s16 }
  0x8d   : > { %p4052_p12 = scmp.lt.u32.totalorder %s4043_s16, %s4613_s10 }
  0x8e   : > { %p4046_p7 = pnand %p4044_p5, %p4582_p4  ;;  %p4051_p10 = por %p4050_p9, %p4049_p3 }
  0x90   : > { %p4047_p11 = pneg %p4046_p7  ;;  %p4053_p13 = por %p4052_p12, %p4051_p10 }
  0x92   : > { %p4054_p2 = pnand %p4053_p13, %p4047_p11 }
  0x94   : > { %4057 = shalt.err (!%p4054_p2)
}
  0x95   : > { %s4058_s6 = scalar_lea.vmem %s4617_s11, 2048  ;;  %s4322_s2 = smov [#allocation15]  }
  0x96   : > { %p4059_p1 = scmp.ne.s32.totalorder %s4617_s11, %s4058_s6  ;;  %s4063_s17 = sshll.u32 %s4322_s2, 4  ;;  %s4064_s17 = int_to_ptr.vmem [resolvable:$false] %s4063_s17 }
  0x97   : > { %s4065_s3 = scalar_lea.vmem %s4064_s17, 4096  ;;  %p4066_p5 = scmp.lt.s32.totalorder %s4617_s11, %s4064_s17 }
  0x98   : > { %p4061_p6 = pnand %p4059_p1, %p4582_p4  ;;  %p4067_p7 = scmp.lt.s32.totalorder %s4065_s3, %s4058_s6 }
  0x9a   : > { %p4062_p8 = pneg %p4061_p6  ;;  %p4068_p3 = por %p4067_p7, %p4066_p5 }
  0x9c   : > { %p4069_p9 = pnand %p4068_p3, %p4062_p8 }
  0x9e   : > { %4072 = shalt.err (!%p4069_p9)
}
  0x9f   : > { %s5296_s16 = smov 8   ;;  %s5297_s27 = smov 128  }
  0xa0   : > { %3753 = dma.hbm_to_vmem [thread:$0]  (!%p4562_p0), %s4613_s10, 2048, %s4617_s11, %s4621_s29, %s5297_s27, %s5297_s27, %s5296_s16  }
  0xa1   : > { %s4653_s6 = scalar_lea.hbm %s5218_s14, %s3486_s22  ;;  %s740_s2 = scalar_lea.vmem [#allocation17], %s3381_s15 }
  0xa2   : > { %s747_s17 = sshll.u32 %s740_s2, 4  ;;  %s4323_s3 = smov [#allocation3]   ;;  %s4657_s17 = int_to_ptr.vmem [resolvable:$true] %s747_s17 }
  0xa3   : > { %s559_s12 = sshll.u32 %s4323_s3, 4  ;;  %s4324_s19 = smov [#allocation8]   ;;  %s560_s12 = int_to_ptr.vmem [resolvable:$true] %s559_s12 }
  0xa4   : > { %s591_s9 = sshll.u32 %s4324_s19, 4  ;;  %s5298_s28 = sld [smem:[#allocation34_spill]]  ;;  %s592_s9 = int_to_ptr.vmem [resolvable:$true] %s591_s9 }
  0xa5   : > { %p5300_p10 = scmp.ne.s32.totalorder %s5284_s21, 0 }
  0xaa   : > { %s5299_s1 = smov %s5298_s28  ;;  %s4073_s11 = scalar_lea.hbm %s5298_s28, 256 }
  0xab   : > { %p4074_p11 = scmp.ne.s32.totalorder %s5299_s1, %s4073_s11  ;;  %p4080_p2 = scmp.lt.u32.totalorder %s4073_s11, %s5299_s1 }
  0xad   : > { %p4076_p12 = pnand %p4074_p11, %p5300_p10 }
  0xaf   : > { %p4077_p13 = pneg %p4076_p12 }
  0xb1   : > { %p4082_p1 = pnand %p4080_p2, %p4077_p13 }
  0xb3   : > { %4085 = shalt.err (!%p4082_p1)
}
  0xb4   : > { %s4086_s23 = scalar_lea.vmem %s560_s12, 256  ;;  %p4094_p7 = scmp.lt.s32.totalorder %s560_s12, %s560_s12 }
  0xb5   : > { %p4087_p6 = scmp.ne.s32.totalorder %s560_s12, %s4086_s23  ;;  %p4095_p3 = scmp.lt.s32.totalorder %s4086_s23, %s4086_s23 }
  0xb7   : > { %p4089_p8 = pnand %p4087_p6, %p5300_p10  ;;  %p4096_p9 = por %p4095_p3, %p4094_p7 }
  0xb9   : > { %p4090_p5 = pneg %p4089_p8 }
  0xbb   : > { %p4097_p0 = pnand %p4096_p9, %p4090_p5 }
  0xbd   : > { %4100 = shalt.err (!%p4097_p0)
}
  0xbe   : > { %p5301_p11 = scmp.ne.s32.totalorder %s5282_s24, 0  ;;  %s5302_s5 = sld [smem:[#allocation36_spill]] }
  0xc0   : > { %3731 = dma.hbm_to_vmem [thread:$0]  (!%p5301_p11), %s5299_s1, 256, %s560_s12, [#allocation4], %s5297_s27, %s5297_s27, %s5296_s16  }
  0xc4   : > { %s4101_s7 = scalar_lea.hbm %s5302_s5, 256 }
  0xc5   : > { %p4102_p12 = scmp.ne.s32.totalorder %s5302_s5, %s4101_s7  ;;  %p4108_p2 = scmp.lt.u32.totalorder %s4101_s7, %s5302_s5 }
  0xc7   : > { %p4104_p0 = pnand %p4102_p12, %p5300_p10 }
  0xc9   : > { %p4105_p13 = pneg %p4104_p0 }
  0xcb   : > { %p4110_p1 = pnand %p4108_p2, %p4105_p13 }
  0xcd   : > { %4113 = shalt.err (!%p4110_p1)
}
  0xce   : > { %s4114_s15 = scalar_lea.vmem %s592_s9, 256  ;;  %p4122_p7 = scmp.lt.s32.totalorder %s592_s9, %s592_s9 }
  0xcf   : > { %p4115_p6 = scmp.ne.s32.totalorder %s592_s9, %s4114_s15  ;;  %p4123_p3 = scmp.lt.s32.totalorder %s4114_s15, %s4114_s15 }
  0xd1   : > { %p4117_p8 = pnand %p4115_p6, %p5300_p10  ;;  %p4124_p9 = por %p4123_p3, %p4122_p7 }
  0xd3   : > { %p4118_p5 = pneg %p4117_p8 }
  0xd5   : > { %p4125_p4 = pnand %p4124_p9, %p4118_p5 }
  0xd7   : > { %4128 = shalt.err (!%p4125_p4)
}
  0xd8   : > { %3737 = dma.hbm_to_vmem [thread:$0]  (!%p5301_p11), %s5302_s5, 256, %s592_s9, [#allocation7], %s5297_s27, %s5297_s27, %s5296_s16  }
  0xd9   : > { %s4325_s23 = smov [#allocation11]   ;;  %s3378_s30 = sshll.u32 %s4556_s26, 6 }
  0xda   : > { %s624_s28 = sshll.u32 %s4325_s23, 4  ;;  %s5303_s4 = sld [smem:[#allocation38_spill]]  ;;  %s625_s28 = int_to_ptr.vmem [resolvable:$true] %s624_s28 }
  0xe0   : > { %s4129_s7 = scalar_lea.hbm %s5303_s4, 1024 }
  0xe1   : > { %p4130_p4 = scmp.ne.s32.totalorder %s5303_s4, %s4129_s7  ;;  %p4136_p13 = scmp.lt.u32.totalorder %s4129_s7, %s5303_s4 }
  0xe3   : > { %p4132_p12 = pnand %p4130_p4, %p5300_p10 }
  0xe5   : > { %p4133_p0 = pneg %p4132_p12 }
  0xe7   : > { %p4138_p2 = pnand %p4136_p13, %p4133_p0 }
  0xe9   : > { %4141 = shalt.err (!%p4138_p2)
}
  0xea   : > { %s4142_s9 = scalar_lea.vmem %s625_s28, 1024  ;;  %p4150_p5 = scmp.lt.s32.totalorder %s625_s28, %s625_s28 }
  0xeb   : > { %p4143_p1 = scmp.ne.s32.totalorder %s625_s28, %s4142_s9  ;;  %p4151_p7 = scmp.lt.s32.totalorder %s4142_s9, %s4142_s9 }
  0xed   : > { %p4145_p6 = pnand %p4143_p1, %p5300_p10  ;;  %p4152_p3 = por %p4151_p7, %p4150_p5 }
  0xef   : > { %p4146_p8 = pneg %p4145_p6 }
  0xf1   : > { %p4153_p9 = pnand %p4152_p3, %p4146_p8 }
  0xf3   : > { %4156 = shalt.err (!%p4153_p9)
}
  0xf4   : > { %3743 = dma.hbm_to_vmem [thread:$0]  (!%p5301_p11), %s5303_s4, 1024, %s625_s28, [#allocation10], %s5297_s27, %s5297_s27, %s5296_s16  }
  0xf5   : > { %s3485_s12 = sshll.u32 %s4309_s0, 10  ;;  %s673_s21 = scalar_lea.vmem [#allocation14], %s3378_s30 }
  0xf6   : > { %s680_s22 = sshll.u32 %s673_s21, 4  ;;  %s4727_s20 = scalar_lea.hbm %s5212_s8, %s3485_s12  ;;  %s4729_s22 = int_to_ptr.vmem [resolvable:$true] %s680_s22 }
  0xf7   : > { %s4157_s24 = scalar_lea.hbm %s4727_s20, 1024  ;;  %p5304_p4 = scmp.ne.s32.totalorder %s5293_s18, 0 }
  0xf8   : > { %p4158_p10 = scmp.ne.s32.totalorder %s4727_s20, %s4157_s24  ;;  %s4162_s28 = scalar_lea.hbm %s5212_s8, 2048 }
  0xf9   : > { %p4163_p11 = scmp.lt.u32.totalorder %s4727_s20, %s5212_s8  ;;  %p4164_p13 = scmp.lt.u32.totalorder %s4162_s28, %s4157_s24 }
  0xfa   : > { %p4160_p12 = pnand %p4158_p10, %p5304_p4  ;;  %p4166_p1 = scmp.lt.u32.totalorder %s4157_s24, %s4727_s20 }
  0xfb   : > { %p4165_p2 = por %p4164_p13, %p4163_p11 }
  0xfc   : > { %p4161_p0 = pneg %p4160_p12 }
  0xfd   : > { %p4167_p6 = por %p4166_p1, %p4165_p2 }
  0xff   : > { %p4168_p8 = pnand %p4167_p6, %p4161_p0 }
 0x101   : > { %4171 = shalt.err (!%p4168_p8)
}
 0x102   : > { %s4172_s2 = scalar_lea.vmem %s4729_s22, 1024  ;;  %s4326_s3 = smov [#allocation14]  }
 0x103   : > { %p4173_p5 = scmp.ne.s32.totalorder %s4729_s22, %s4172_s2  ;;  %s4177_s11 = sshll.u32 %s4326_s3, 4  ;;  %s4178_s11 = int_to_ptr.vmem [resolvable:$false] %s4177_s11 }
 0x104   : > { %s4179_s10 = scalar_lea.vmem %s4178_s11, 2048  ;;  %p4180_p9 = scmp.lt.s32.totalorder %s4729_s22, %s4178_s11 }
 0x105   : > { %p4175_p7 = pnand %p4173_p5, %p5304_p4  ;;  %p4181_p10 = scmp.lt.s32.totalorder %s4179_s10, %s4172_s2 }
 0x107   : > { %p4176_p3 = pneg %p4175_p7  ;;  %p4182_p12 = por %p4181_p10, %p4180_p9 }
 0x109   : > { %p4183_p11 = pnand %p4182_p12, %p4176_p3 }
 0x10b   : > { %4186 = shalt.err (!%p4183_p11)
}
 0x10c   : > { %s4327_s9 = smov 64   ;;  %s4328_s26 = smov 4  }
 0x10d   : > { %p5305_p0 = scmp.ne.s32.totalorder %s5291_s25, 0  ;;  %s4187_s15 = scalar_lea.hbm %s4653_s6, 2048 }
 0x10e   : > { %p4188_p13 = scmp.ne.s32.totalorder %s4653_s6, %s4187_s15  ;;  %s4192_s23 = scalar_lea.hbm %s5218_s14, 4096 }
 0x10f   : > { %3750 = dma.hbm_to_vmem [thread:$0]  (!%p5305_p0), %s4727_s20, 1024, %s4729_s22, %s4576_s13, %s4327_s9, %s4327_s9, %s4328_s26  }
 0x110   : > { %p4190_p2 = pnand %p4188_p13, %p5304_p4  ;;  %p4193_p6 = scmp.lt.u32.totalorder %s4653_s6, %s5218_s14 }
 0x111   : > { %p4194_p8 = scmp.lt.u32.totalorder %s4192_s23, %s4187_s15  ;;  %p4196_p7 = scmp.lt.u32.totalorder %s4187_s15, %s4653_s6 }
 0x112   : > { %p4191_p1 = pneg %p4190_p2 }
 0x113   : > { %p4195_p5 = por %p4194_p8, %p4193_p6 }
 0x115   : > { %p4197_p3 = por %p4196_p7, %p4195_p5 }
 0x117   : > { %p4198_p9 = pnand %p4197_p3, %p4191_p1 }
 0x119   : > { %4201 = shalt.err (!%p4198_p9)
}
 0x11a   : > { %s4202_s13 = scalar_lea.vmem %s4657_s17, 2048  ;;  %s4329_s22 = smov [#allocation17]  }
 0x11b   : > { %p4203_p10 = scmp.ne.s32.totalorder %s4657_s17, %s4202_s13  ;;  %s4207_s20 = sshll.u32 %s4329_s22, 4  ;;  %s4208_s20 = int_to_ptr.vmem [resolvable:$false] %s4207_s20 }
 0x11c   : > { %s4209_s16 = scalar_lea.vmem %s4208_s20, 4096  ;;  %p4210_p13 = scmp.lt.s32.totalorder %s4657_s17, %s4208_s20 }
 0x11d   : > { %p4205_p12 = pnand %p4203_p10, %p5304_p4  ;;  %p4211_p2 = scmp.lt.s32.totalorder %s4209_s16, %s4202_s13 }
 0x11f   : > { %p4206_p11 = pneg %p4205_p12  ;;  %p4212_p6 = por %p4211_p2, %p4210_p13 }
 0x121   : > { %p4213_p8 = pnand %p4212_p6, %p4206_p11 }
 0x123   : > { %4216 = shalt.err (!%p4213_p8)
}
 0x124   : > { %3756 = dma.hbm_to_vmem [thread:$0]  (!%p5305_p0), %s4653_s6, 2048, %s4657_s17, %s4621_s29, %s4327_s9, %s4327_s9, %s4328_s26  }
 0x125   : > { %s5306_s18 = sld [smem:[#allocation30_spill]] }
 0x12b   : > { %p5307_p4 = scmp.ne.s32.totalorder %s5306_s18, 0 }
 0x12c   : > { %s5308_s27 = sld [smem:[#allocation29_spill]] (!%p5307_p4) }
 0x12d   : > { %777 = sbr.rel (%p5307_p4) target bundleno = 3893 (0xf35), region = 92 }
 0x132   : > { %p5309_p1 = scmp.eq.s32.totalorder (!%p5307_p4), %s5308_s27, 0 }
 0x134   : > { %4268 = dma.done.wait (%p5309_p1), [#allocation4], 256   ;;  %p5310_p5 = pmov %p5309_p1 }
 0x135   : > { %p5311_p7 = pmov %p5309_p1 }
 0x136   : > { %4270 = vsyncadd (%p5310_p5), [#allocation4], 4294967040 }
 0x137   : > { %4272 = dma.done.wait (%p5311_p7), [#allocation7], 512   ;;  %p5312_p3 = pmov %p5309_p1 }
 0x138   : > { %p5313_p9 = pmov %p5309_p1 }
 0x139   : > { %4274 = vsyncadd (%p5312_p3), [#allocation7], 4294966784 }
 0x13a   : > { %4276 = dma.done.wait (%p5313_p9), [#allocation10], 1280   ;;  %p5314_p0 = pmov %p5309_p1 }
 0x13b   : > { %s5315_s29 = sld [smem:[#allocation25_spill]]  ;;  %s799_s6 = sand.u32 1, %s5308_s27  }
 0x13c   : > { %4278 = vsyncadd (%p5314_p0), [#allocation10], 4294966016  ;;  %s5316_s25 = sld [smem:[#allocation32_spill]]  ;;  %s800_s30 = scalar_lea.sflag [#allocation13], %s799_s6 }
 0x141   : > { %s801_s17 = sand.u32 1, %s5315_s29  }
 0x142   : > { %s3694_s28 = smul.u32 192, %s801_s17  ;;  %p5317_p10 = scmp.ne.s32.totalorder %s5316_s25, 0 }
 0x144   : > { %s4797_s7 = scalar_lea.vmem [#allocation12], %s3694_s28 }
 0x145   : > { %4280 = dma.done.wait (%p5317_p10), %s800_s30, 4096  }
 0x146   : > { %4282 = vsyncadd (%p5317_p10), %s800_s30, 4294963200  ;;  %s3393_s2 = sshll.u32 %s801_s17, 6  ;;  %s3394_s3 = sshll.u32 %s801_s17, 7 }
 0x147   : > { %s4803_s11 = scalar_lea.vmem [#allocation14], %s3393_s2  ;;  %s818_s10 = scalar_lea.sflag [#allocation16], %s799_s6 }
 0x148   : > { %s4805_s9 = scalar_lea.vmem [#allocation15], %s3394_s3 }
 0x149   : > { %4284 = dma.done.wait (%p5317_p10), %s818_s10, 4096  }
 0x14a   : > { %4286 = vsyncadd (%p5317_p10), %s818_s10, 4294963200  ;;  %s5318_s26 = sld [smem:[#allocation27_spill]]  ;;  %s5319_s19 = sld [smem:[#allocation42_spill]] }
 0x14b   : > { %s5322_s28 = sld [smem:[#allocation41_spill]]  ;;  %s5323_s4 = sld [smem:[#allocation46_spill]] }
 0x14c   : > { %s5325_s16 = sld [smem:[#allocation48_spill]]  ;;  %s5326_s25 = sld [smem:[#allocation49_spill]] }
 0x150   : > { %p924_p12 = scmp.lt.s32.totalorder %s5318_s26, 1  ;;  %p3397_p11 = scmp.ne.s32.totalorder %s5318_s26, 0 }
 0x151   : > { %v956_v0 = vld [vmem:[#allocation3] sm:$0xff] (!%p3397_p11)  ;;  %v957_v1 = vld [vmem:[#allocation3 + $0x8] sm:$0xff] (!%p3397_p11) }
 0x152   : > { %s4813_s15 = scalar_select %p924_p12, %s5318_s26, 1 }
 0x153   : > { %958 = vst [vmem:[#allocation2] sm:$0xff] (!%p3397_p11), %v956_v0  ;;  %959 = vst [vmem:[#allocation2 + $0x8] sm:$0xff] (!%p3397_p11), %v957_v1 }
 0x154   : > { %s3695_s12 = smul.u32 3, %s4813_s15  ;;  %s930_s24 = scalar_lea.vmem %s5319_s19, %s4813_s15 }
 0x155   : > { %s3396_s2 = sshll.u32 %s4813_s15, 1  ;;  %s5324_s19 = sld [smem:[#allocation47_spill]] }
 0x156   : > { %s4831_s30 = scalar_lea.vmem %s5322_s28, %s3695_s12  ;;  %s4837_s5 = scalar_lea.vmem %s5323_s4, %s3396_s2 }
 0x157   : > { %s946_s18 = scalar_lea.vmem %s5325_s16, %s4813_s15  ;;  %s949_s6 = scalar_lea.vmem %s5326_s25, %s4813_s15 }
 0x158   : > { %s4851_s12 = scalar_lea.vmem [#allocation17], %s3394_s3  ;;  %955 = sbr.rel (%p3397_p11) target bundleno = 351 (0x15f), region = 132 }
 0x15b   : > { %s943_s13 = scalar_lea.vmem %s5324_s19, %s4813_s15 }
 0x15f PF: > { %v3837_v2 = vld [vmem:[%s4797_s7 + $0x4] ss:$12 sps:$4 sm:$0xff]   ;;  %v3839_v3 = vld [vmem:[%s4797_s7] ss:$12 sps:$4 sm:$0xff]   ;;  %v4330_v4 = vmov 0   ;;  %v4873_v20 = vld [vmem:[#allocation2 + $0x8] sm:$0xff]  ;;  %v1015_v22 = vlaneseq }
 0x160   : > { %1190 = vmatprep.mubr.bf16.mxu0 %v4330_v4  ;;  %1158 = vmatprep.subr.bf16.mxu0 %v3837_v2  ;;  %v3840_v5 = vld [vmem:[%s4797_s7 + $0x1c] ss:$12 sps:$4 sm:$0xff]   ;;  %v3842_v6 = vld [vmem:[%s4797_s7 + $0x18] ss:$12 sps:$4 sm:$0xff]   ;;  %v3843_v7 = vld [vmem:[%s4797_s7 + $0x34] ss:$12 sps:$4 sm:$0xff]  }
 0x161   : > { %1159 = vmatpush1.bf16.msra.mxu0 %v3839_v3  ;;  %v3845_v8 = vld [vmem:[%s4797_s7 + $0x30] ss:$12 sps:$4 sm:$0xff]   ;;  %v3846_v9 = vld [vmem:[%s4797_s7 + $0x4c] ss:$12 sps:$4 sm:$0xff]   ;;  %v3848_v10 = vld [vmem:[%s4797_s7 + $0x48] ss:$12 sps:$4 sm:$0xff]  }
 0x162   : > { %1160 = vmatprep.subr.bf16.mxu0 %v3840_v5  ;;  %v3849_v11 = vld [vmem:[%s4797_s7 + $0x64] ss:$12 sps:$4 sm:$0xff]   ;;  %v3851_v12 = vld [vmem:[%s4797_s7 + $0x60] ss:$12 sps:$4 sm:$0xff]   ;;  %v3852_v13 = vld [vmem:[%s4797_s7 + $0x7c] ss:$12 sps:$4 sm:$0xff]  }
 0x163   : > { %v3854_v14 = vld [vmem:[%s4797_s7 + $0x78] ss:$12 sps:$4 sm:$0xff]   ;;  %v3855_v15 = vld [vmem:[%s4797_s7 + $0x94] ss:$12 sps:$4 sm:$0xff]   ;;  %v3857_v16 = vld [vmem:[%s4797_s7 + $0x90] ss:$12 sps:$4 sm:$0xff]  }
 0x164   : > { %v3858_v17 = vld [vmem:[%s4797_s7 + $0xac] ss:$12 sps:$4 sm:$0xff]   ;;  %v3860_v18 = vld [vmem:[%s4797_s7 + $0xa8] ss:$12 sps:$4 sm:$0xff]   ;;  %v4880_v23 = vshrl.u32 %v1015_v22, 7  ;;  %v4331_v26 = vmov 0.0  }
 0x165   : > { %1161 = vmatpush1.bf16.msra.mxu0 %v3842_v6  ;;  %v4871_v19 = vld [vmem:[#allocation2] sm:$0xff]  ;;  %3560 = vmatprep.subr.bf16.mxu1 %v4331_v26  ;;  %vm4332_vm0 = vmmov 0   ;;  %s4333_s4 = smov 1   ;;  %s4334_s1 = smov 127   ;;  %v964_v39 = vld [vmem:[#allocation8] sm:$0xff]  ;;  %vm1355_vm1 = vcmask 64512  }
 0x166   : > { %1162 = vmatprep.subr.bf16.mxu0 %v3843_v7  ;;  %v4877_v21 = vpack.c.bf16 %v4873_v20, %v4871_v19  ;;  %v1021_v24 = vsub.s32 1, %v4880_v23  ;;  %v4884_v25 = vld [vmem:[%s4831_s30] sm:$0x7]  ;;  %v1017_v27 = vsub.s32 0, %v4880_v23  ;;  %3576 = vmatprep.mubr.msk.bf16.mxu1 %vm4332_vm0, %v4331_v26  ;;  %s5327_s16 = sld [smem:[#allocation39_spill]]  ;;  %v968_v3 = vld [vmem:[#allocation11] sm:$0xff] }
 0x167   : > { %v962_v38 = vld [vmem:[#allocation6] sm:$0xff]  ;;  %v3862_v60 = vld [vmem:[%s4797_s7 + $0x20] ss:$12 sps:$4 sm:$0xff]   ;;  %v3863_v61 = vld [vmem:[%s4797_s7 + $0x38] ss:$12 sps:$4 sm:$0xff]   ;;  %s5331_s27 = sld [smem:[#allocation44_spill]] }
 0x168   : > { %v1022_v28 = vrot.slane %v4884_v25, %v1021_v24  ;;  %v1018_v30 = vrot.slane %v4884_v25, %v1017_v27  ;;  %v966_v40 = vld [vmem:[#allocation9] sm:$0xff]  ;;  %v3866_v0 = vld [vmem:[%s4797_s7 + $0x80] ss:$12 sps:$4 sm:$0xff]   ;;  %v3867_v1 = vld [vmem:[%s4797_s7 + $0x98] ss:$12 sps:$4 sm:$0xff]  }
 0x169   : > { %1163 = vmatpush1.bf16.msra.mxu0 %v3845_v8  ;;  %v3861_v59 = vld [vmem:[%s4797_s7 + $0x8] ss:$12 sps:$4 sm:$0xff]   ;;  %v3864_v62 = vld [vmem:[%s4797_s7 + $0x50] ss:$12 sps:$4 sm:$0xff]  }
 0x16a   : > { %1164 = vmatprep.subr.bf16.mxu0 %v3846_v9  ;;  %3561 = vmatpush3.bf16.msra.mxu1 %v3861_v59  ;;  %v3865_v63 = vld [vmem:[%s4797_s7 + $0x68] ss:$12 sps:$4 sm:$0xff]   ;;  %v3868_v2 = vld [vmem:[%s4797_s7 + $0xb0] ss:$12 sps:$4 sm:$0xff]   ;;  %s5336_s7 = sld [smem:[#allocation27_spill]] }
 0x16b   : > { %3562 = vmatprep.subr.bf16.mxu1 %v4331_v26  ;;  %v969_v8 = vld [vmem:[#allocation11 + $0x8] sm:$0xff] }
 0x16c   : > { %v4914_v54 = vld [vmem:[%s5327_s16] ss:$0 sm:$0xff]  ;;  %v4923_v57 = vld [vmem:[%s5327_s16 + $0x1] ss:$0 sm:$0xff] }
 0x16d   : > { %1165 = vmatpush1.bf16.msra.mxu0 %v3848_v10  ;;  %s5332_s29 = scalar_lea.vmem %s5331_s27, %s4813_s15 }
 0x16e   : > { %1166 = vmatprep.subr.bf16.mxu0 %v3849_v11  ;;  %3563 = vmatpush3.bf16.msra.mxu1 %v3862_v60 }
 0x16f   : > { %3564 = vmatprep.subr.bf16.mxu1 %v4331_v26 }
 0x170   : > { %p3480_p13 = scmp.ne.s32.totalorder %s5336_s7, 1 }
 0x171   : > { %1167 = vmatpush1.bf16.msra.mxu0 %v3851_v12 }
 0x172   : > { %1168 = vmatprep.subr.bf16.mxu0 %v3852_v13  ;;  %3565 = vmatpush3.bf16.msra.mxu1 %v3863_v61 }
 0x173   : > { %3566 = vmatprep.subr.bf16.mxu1 %v4331_v26 }
 0x175   : > { %1169 = vmatpush1.bf16.msra.mxu0 %v3854_v14 }
 0x176   : > { %1170 = vmatprep.subr.bf16.mxu0 %v3855_v15  ;;  %3567 = vmatpush3.bf16.msra.mxu1 %v3864_v62  ;;  %v965_v62 = vld [vmem:[#allocation8 + $0x8] sm:$0xff] }
 0x177   : > { %3568 = vmatprep.subr.bf16.mxu1 %v4331_v26 }
 0x179   : > { %1171 = vmatpush1.bf16.msra.mxu0 %v3857_v16 }
 0x17a   : > { %1172 = vmatprep.subr.bf16.mxu0 %v3858_v17  ;;  %3569 = vmatpush3.bf16.msra.mxu1 %v3865_v63 }
 0x17b   : > { %3570 = vmatprep.subr.bf16.mxu1 %v4331_v26 }
 0x17d   : > { %1173 = vmatpush1.bf16.msra.mxu0 %v3860_v18 }
 0x17e   : > { %3580 = vmatprep.subr.mxu0 %v4331_v26  ;;  %3571 = vmatpush3.bf16.msra.mxu1 %v3866_v0  ;;  %v963_v0 = vld [vmem:[#allocation6 + $0x8] sm:$0xff] }
 0x17f   : > { %3572 = vmatprep.subr.bf16.mxu1 %v4331_v26 }
 0x180   : > { %1191 = vmatmul.mubr.bf16.vlgmr.msra.gmra.mrb[0].mxu0 %v4877_v21 }
 0x181   : > { %3582 = vmatprep.mubr.msk.f32.mxu0 %vm4332_vm0, %v4331_v26 }
 0x182   : > { %3573 = vmatpush3.bf16.msra.mxu1 %v3867_v1 }
 0x183   : > { %3574 = vmatprep.subr.bf16.mxu1 %v4331_v26 }
 0x186   : > { %3575 = vmatpush3.bf16.msra.mxu1 %v3868_v2 }
 0x187   : > { %3620 = vmatprep.subr.mxu1 %v4331_v26 }
 0x189   : > { %3577 = vmatmul.mubr.bf16.vlgmr.msra.gmra.mrb[0].mxu1 %v4877_v21 }
 0x18a   : > { %3622 = vmatprep.mubr.msk.f32.mxu1 %vm4332_vm0, %v4331_v26 }
 0x253   : > { %v1192_v29 = vpop.f32.mrb[0].mxu0 }
 0x254   : > { %v1194_v31 = vpop.f32.mrb[1].mxu0  ;;  %v1193_v37 = vadd.f32 %v1192_v29, %v1018_v30 }
 0x255   : > { %v1195_v32 = vadd.f32 %v1194_v31, %v1022_v28  ;;  %v1196_v33 = vpop.f32.mrb[2].mxu0  ;;  %v1025_v31 = vsub.s32 2, %v4880_v23  ;;  %v3461_v23 = vld [vmem:[%s943_s13] ss:$0 sm:$0xff] }
 0x256   : > { %v4899_v34 = vadd.f32 %v1196_v33, %v1018_v30  ;;  %v1198_v35 = vpop.f32.mrb[3].mxu0  ;;  %v1242_v50 = vmul.f32 %v1193_v37, %v962_v38 }
 0x257   : > { %v4901_v36 = vadd.f32 %v1198_v35, %v1022_v28  ;;  %1270 = vrot.lane.b32.xlu1 %v1195_v32, %s4333_s4  ;;  %1262 = vrot.lane.b32.xlu0 %v1195_v32, %s4334_s1  ;;  %v1260_v43 = vmul.f32 %v1195_v32, %v962_v38  ;;  %v1026_v33 = vrot.slane %v4884_v25, %v1025_v31 }
 0x25b   : > { %1252 = vrot.lane.b32.xlu1 %v1193_v37, %s4333_s4  ;;  %1244 = vrot.lane.b32.xlu0 %v1193_v37, %s4334_s1 }
 0x25c   : > { %v1235_v32 = vpop.f32.mrb[0].mxu1 }
 0x25d   : > { %v3578_v35 = vpop.f32.mrb[1].mxu1  ;;  %v4958_v38 = vadd.f32 %v1235_v32, %v1026_v33 }
 0x25e   : > { %v1238_v37 = vpop.f32.mrb[2].mxu1  ;;  %v973_v35 = vld [vmem:[#allocation11 + $0x28] sm:$0xff] }
 0x25f   : > { %v1367_v25 = vmul.f32 %v4914_v54, %v4958_v38 }
 0x2c9   : > { %v1271_v41 = vpop.permute.xlu1 %1270  ;;  %v1263_v42 = vpop.permute.xlu0 %1262 }
 0x2ca   : > { %v1266_v44 = vmul.f32 %v1263_v42, %v964_v39  ;;  %v1274_v45 = vmul.f32 %v1271_v41, %v966_v40  ;;  %v1456_v41 = vmul.f32 %v4923_v57, %v4958_v38 }
 0x2cc   : > { %v1268_v46 = vadd.f32 %v1266_v44, %v1260_v43 }
 0x2cd   : > { %v1253_v47 = vpop.permute.xlu1 %1252  ;;  %v1245_v48 = vpop.permute.xlu0 %1244 }
 0x2ce   : > { %v4907_v49 = vadd.f32 %v1274_v45, %v1268_v46  ;;  %v1248_v51 = vmul.f32 %v1245_v48, %v964_v39  ;;  %v1256_v52 = vmul.f32 %v1253_v47, %v966_v40  ;;  %v3579_v39 = vpop.f32.mrb[3].mxu1  ;;  %v4960_v40 = vadd.f32 %v1238_v37, %v1026_v33  ;;  %v4974_v48 = vld [vmem:[%s5327_s16 + $0x2] ss:$0 sm:$0xff]  ;;  %v971_v37 = vld [vmem:[#allocation11 + $0x18] sm:$0xff] }
 0x2cf   : > { %v972_v39 = vld [vmem:[#allocation11 + $0x20] sm:$0xff] }
 0x2d0   : > { %v1250_v53 = vadd.f32 %v1248_v51, %v1242_v50  ;;  %3581 = vmatpush3.xpose.msra.mxu0 %v4907_v49  ;;  %v1691_v51 = vmul.f32 %v4974_v48, %v4958_v38 }
 0x2d1   : > { %3585 = vmatprep.subr.mxu0 %v4331_v26 }
 0x2d2   : > { %v4916_v55 = vadd.f32 %v1256_v52, %v1250_v53  ;;  %v970_v52 = vld [vmem:[#allocation11 + $0x10] sm:$0xff] }
 0x2d4   : > { %v1284_v56 = vmul.f32 %v4914_v54, %v4916_v55  ;;  %v1374_v58 = vmul.f32 %v4923_v57, %v4916_v55  ;;  %v1609_v50 = vmul.f32 %v4974_v48, %v4916_v55 }
 0x2d6   : > { %3583 = vmatmul.mubr.f32.vlgmr.msra.gmra.mrb[4].mxu0 %v1284_v56 }
 0x2d7   : > { %3586 = vmatpush3.xpose.msra.mxu0 %v4907_v49  ;;  %3587 = vmatprep.mubr.msk.f32.mxu0 %vm4332_vm0, %v4331_v26 }
 0x2d8   : > { %3590 = vmatprep.subr.mxu0 %v4331_v26 }
 0x2da   : > { %3588 = vmatmul.mubr.f32.vlgmr.msra.gmra.mrb[6].mxu0 %v1374_v58 }
 0x2db   : > { %3592 = vmatprep.mubr.msk.f32.mxu0 %vm4332_vm0, %v4331_v26  ;;  %3591 = vmatpush3.msra.mxu0 %v1456_v41 }
 0x2dc   : > { %3595 = vmatprep.subr.mxu0 %v4331_v26 }
 0x3a9   : > { %v1351_v5 = vpop.f32.mrb[4].mxu0 }
 0x3aa   : > { %v1352_v6 = vadd.f32 %v1351_v5, %v968_v3  ;;  %v3584_v7 = vpop.f32.mrb[5].mxu0  ;;  %v967_v3 = vld [vmem:[#allocation9 + $0x8] sm:$0xff]  ;;  %v1261_v5 = vmul.f32 %v4901_v36, %v963_v0 }
 0x3ac   : > { %v1356_v9 = vsel %vm1355_vm1, %v1352_v6, -inf }
 0x3ad   : > { %1357 = vmax.xlane.f32.xlu1 %v1356_v9  ;;  %v1441_v10 = vpop.f32.mrb[6].mxu0 }
 0x3ae   : > { %v1442_v11 = vadd.f32 %v1441_v10, %v969_v8  ;;  %v3589_v12 = vpop.f32.mrb[7].mxu0 }
 0x3b0   : > { %v1445_v13 = vsel %vm1355_vm1, %v1442_v11, -inf }
 0x3b1   : > { %1446 = vmax.xlane.f32.xlu0 %v1445_v13 }
 0x43a   : > { %v1358_v14 = vpop.xlane.xlu1 %1357 }
 0x43b   : > { %v1359_v15 = vsub.f32 %v1352_v6, %v1358_v14 }
 0x43d   : > { %v1360_v18 = vmul.f32 1.442695, %v1359_v15 }
 0x43e   : > { %v1447_v16 = vpop.xlane.xlu0 %1446 }
 0x43f   : > { %v1448_v17 = vsub.f32 %v1442_v11, %v1447_v16 }
 0x441   : > { %v1449_v21 = vmul.f32 1.442695, %v1448_v17 }
 0x443   : > { %3917 = vpow2.f32 %v1449_v21 }
 0x444   : > { %3919 = vpow2.f32 %v1360_v18 }
 0x44d   : > { %v3918_v22 = vpop.eup %3917 }
 0x44e   : > { %v1451_v28 = vsel %vm1355_vm1, %v3918_v22, 0.0  ;;  %v3920_v29 = vpop.eup %3919 }
 0x44f   : > { %1452 = vadd.xlane.f32.xlu0 %v1451_v28  ;;  %v1362_v30 = vsel %vm1355_vm1, %v3920_v29, 0.0 }
 0x453   : > { %1363 = vadd.xlane.f32.xlu0 %v1362_v30 }
 0x4dc   : > { %v1453_v42 = vpop.xlane.xlu0 %1452 }
 0x4dd   : > { %3921 = vrcp.f32 %v1453_v42 }
 0x4e0   : > { %v1364_v43 = vpop.xlane.xlu0 %1363 }
 0x4e1   : > { %3923 = vrcp.f32 %v1364_v43 }
 0x4e7   : > { %v3922_v44 = vpop.eup %3921 }
 0x4e8   : > { %v1455_v45 = vmul.f32 %v3922_v44, %v3918_v22 }
 0x4ea   : > { %3593 = vmatmul.mubr.msk.f32.vlgmr.msra.gmra.mrb[8].mxu0 %vm1355_vm1, %v1455_v45 }
 0x4eb   : > { %3596 = vmatpush3.msra.mxu0 %v1367_v25  ;;  %3597 = vmatprep.mubr.msk.f32.mxu0 %vm4332_vm0, %v4331_v26  ;;  %v3924_v46 = vpop.eup %3923 }
 0x4ec   : > { %3600 = vmatprep.subr.mxu0 %v4331_v26  ;;  %v1366_v47 = vmul.f32 %v3924_v46, %v3920_v29  ;;  %v5005_v29 = vld [vmem:[%s5327_s16 + $0x3] ss:$0 sm:$0xff] }
 0x4ed   : > { %v1772_v30 = vmul.f32 %v5005_v29, %v4916_v55  ;;  %v1854_v31 = vmul.f32 %v5005_v29, %v4958_v38 }
 0x4f2   : > { %3598 = vmatmul.mubr.msk.f32.vlgmr.msra.gmra.mrb[8].mxu0 %vm1355_vm1, %v1366_v47 }
 0x4f3   : > { %3601 = vmatpush3.xpose.msra.mxu0 %v4907_v49  ;;  %3602 = vmatprep.mubr.msk.f32.mxu0 %vm4332_vm0, %v4331_v26 }
 0x4f4   : > { %3605 = vmatprep.subr.mxu0 %v4331_v26 }
 0x4f6   : > { %3603 = vmatmul.mubr.f32.vlgmr.msra.gmra.mrb[10].mxu0 %v1609_v50 }
 0x4f7   : > { %3606 = vmatpush3.msra.mxu0 %v1691_v51  ;;  %3607 = vmatprep.mubr.msk.f32.mxu0 %vm4332_vm0, %v4331_v26  ;;  %v974_v51 = vld [vmem:[#allocation11 + $0x30] sm:$0xff] }
 0x4f8   : > { %3610 = vmatprep.subr.mxu0 %v4331_v26 }
 0x5c9   : > { %v1676_v53 = vpop.f32.mrb[10].mxu0 }
 0x5ca   : > { %v1677_v56 = vadd.f32 %v1676_v53, %v970_v52  ;;  %v3604_v58 = vpop.f32.mrb[11].mxu0  ;;  %v975_v53 = vld [vmem:[#allocation11 + $0x38] sm:$0xff] }
 0x5cc   : > { %v1680_v59 = vsel %vm1355_vm1, %v1677_v56, -inf }
 0x5cd   : > { %1681 = vmax.xlane.f32.xlu1 %v1680_v59 }
 0x5de   : > { %1264 = vrot.lane.b32.xlu1 %v4901_v36, %s4334_s1 }
 0x5e2   : > { %1272 = vrot.lane.b32.xlu1 %v4901_v36, %s4333_s4  ;;  %v1243_v36 = vmul.f32 %v4899_v34, %v963_v0 }
 0x5e6   : > { %1254 = vrot.lane.b32.xlu1 %v4899_v34, %s4333_s4 }
 0x65a   : > { %v1682_v60 = vpop.xlane.xlu1 %1681 }
 0x65b   : > { %v1683_v61 = vsub.f32 %v1677_v56, %v1682_v60 }
 0x65d   : > { %v1684_v63 = vmul.f32 1.442695, %v1683_v61 }
 0x65e   : > { %v1265_v1 = vpop.permute.xlu1 %1264 }
 0x65f   : > { %3925 = vpow2.f32 %v1684_v63  ;;  %v1267_v2 = vmul.f32 %v1265_v1, %v965_v62 }
 0x661   : > { %v1269_v7 = vadd.f32 %v1267_v2, %v1261_v5 }
 0x662   : > { %v1273_v6 = vpop.permute.xlu1 %1272 }
 0x663   : > { %v1275_v8 = vmul.f32 %v1273_v6, %v967_v3 }
 0x665   : > { %v1277_v9 = vadd.f32 %v1275_v8, %v1269_v7 }
 0x666   : > { %v1255_v13 = vpop.permute.xlu1 %1254 }
 0x667   : > { %3621 = vmatpush3.xpose.msra.mxu1 %v1277_v9  ;;  %v1257_v16 = vmul.f32 %v1255_v13, %v967_v3 }
 0x668   : > { %3625 = vmatprep.subr.mxu1 %v4331_v26 }
 0x669   : > { %v3926_v10 = vpop.eup %3925 }
 0x66a   : > { %v1686_v11 = vsel %vm1355_vm1, %v3926_v10, 0.0 }
 0x66b   : > { %1687 = vadd.xlane.f32.xlu0 %v1686_v11 }
 0x681   : > { %1246 = vrot.lane.b32.xlu0 %v4899_v34, %s4334_s1 }
 0x6f8   : > { %v1688_v12 = vpop.xlane.xlu0 %1687 }
 0x6f9   : > { %3927 = vrcp.f32 %v1688_v12 }
 0x6fc   : > { %v1247_v14 = vpop.permute.xlu0 %1246 }
 0x6fd   : > { %v1249_v15 = vmul.f32 %v1247_v14, %v965_v62 }
 0x6ff   : > { %v1251_v17 = vadd.f32 %v1249_v15, %v1243_v36 }
 0x701   : > { %v1259_v18 = vadd.f32 %v1257_v16, %v1251_v17 }
 0x703   : > { %v3928_v21 = vpop.eup %3927  ;;  %v1929_v22 = vmul.f32 %v4914_v54, %v1259_v18  ;;  %v2012_v34 = vmul.f32 %v4923_v57, %v1259_v18  ;;  %v2398_v55 = vmul.f32 %v5005_v29, %v1259_v18 }
 0x704   : > { %v1690_v28 = vmul.f32 %v3928_v21, %v3926_v10 }
 0x705   : > { %3623 = vmatmul.mubr.f32.vlgmr.msra.gmra.mrb[4].mxu1 %v1929_v22 }
 0x706   : > { %3626 = vmatpush3.xpose.msra.mxu1 %v1277_v9  ;;  %3608 = vmatmul.mubr.msk.f32.vlgmr.msra.gmra.mrb[8].mxu0 %vm1355_vm1, %v1690_v28 }
 0x707   : > { %3611 = vmatpush3.xpose.msra.mxu0 %v4907_v49  ;;  %3627 = vmatprep.mubr.msk.f32.mxu1 %vm4332_vm0, %v4331_v26  ;;  %v2241_v49 = vmul.f32 %v4974_v48, %v1259_v18 }
 0x708   : > { %3640 = vmatprep.subr.mxu1 %v4331_v26  ;;  %3612 = vmatprep.mubr.msk.f32.mxu0 %vm4332_vm0, %v4331_v26 }
 0x709   : > { %3615 = vmatprep.subr.mxu0 %v4331_v26  ;;  %3628 = vmatmul.mubr.f32.vlgmr.msra.gmra.mrb[6].mxu1 %v2012_v34 }
 0x70a   : > { %3641 = vmatpush3.xpose.msra.mxu1 %v1277_v9  ;;  %3613 = vmatmul.mubr.f32.vlgmr.msra.gmra.mrb[12].mxu0 %v1772_v30 }
 0x70b   : > { %3616 = vmatpush3.msra.mxu0 %v1854_v31  ;;  %3642 = vmatprep.mubr.msk.f32.mxu1 %vm4332_vm0, %v4331_v26 }
 0x70c   : > { %3650 = vmatprep.subr.mxu1 %v4331_v26  ;;  %3617 = vmatprep.mubr.msk.f32.mxu0 %vm4332_vm0, %v4331_v26 }
 0x70d   : > { %3643 = vmatmul.mubr.f32.vlgmr.msra.gmra.mrb[8].mxu1 %v2241_v49  ;;  %3630 = vmatprep.subr.mxu0 %v4331_v26 }
 0x70e   : > { %3651 = vmatpush3.xpose.msra.mxu1 %v1277_v9  ;;  %3652 = vmatprep.mubr.msk.f32.mxu1 %vm4332_vm0, %v4331_v26 }
 0x70f   : > { %3660 = vmatprep.subr.bf16.mxu1 %v4331_v26 }
 0x711   : > { %3653 = vmatmul.mubr.f32.vlgmr.msra.gmra.mrb[10].mxu1 %v2398_v55 }
 0x712   : > { %3676 = vmatprep.mubr.msk.bf16.mxu1 %vm4332_vm0, %v4331_v26 }
 0x7d8   : > { %v1996_v32 = vpop.f32.mrb[4].mxu1 }
 0x7d9   : > { %v3624_v33 = vpop.f32.mrb[5].mxu1  ;;  %v1997_v46 = vadd.f32 %v1996_v32, %v972_v39 }
 0x7db   : > { %v2000_v59 = vsel %vm1355_vm1, %v1997_v46, -inf }
 0x7dc   : > { %v2079_v38 = vpop.f32.mrb[6].mxu1 }
 0x7dd   : > { %v2080_v41 = vadd.f32 %v2079_v38, %v973_v35  ;;  %v1839_v42 = vpop.f32.mrb[12].mxu0  ;;  %v3629_v43 = vpop.f32.mrb[7].mxu1  ;;  %v2094_v38 = vmul.f32 %v4923_v57, %v4960_v40 }
 0x7de   : > { %v1840_v44 = vadd.f32 %v1839_v42, %v971_v37  ;;  %v3614_v25 = vpop.f32.mrb[13].mxu0  ;;  %v2011_v42 = vmul.f32 %v4914_v54, %v4960_v40 }
 0x7df   : > { %v2083_v45 = vsel %vm1355_vm1, %v2080_v41, -inf  ;;  %v2323_v25 = vmul.f32 %v4974_v48, %v4960_v40 }
 0x7e0   : > { %2084 = vmax.xlane.f32.xlu1 %v2083_v45  ;;  %v2308_v47 = vpop.f32.mrb[8].mxu1  ;;  %v1843_v50 = vsel %vm1355_vm1, %v1840_v44, -inf }
 0x7e1   : > { %v3644_v52 = vpop.f32.mrb[9].mxu1  ;;  %1844 = vmax.xlane.f32.xlu0 %v1843_v50  ;;  %v2309_v56 = vadd.f32 %v2308_v47, %v974_v51  ;;  %v3869_v50 = vld [vmem:[%s4803_s11] sm:$0xff]   ;;  %v3870_v51 = vld [vmem:[%s4803_s11 + $0x8] sm:$0xff]  }
 0x7e2   : > { %3661 = vmatpush3.bf16.msra.mxu1 %v3869_v50  ;;  %v3873_v52 = vld [vmem:[%s4803_s11 + $0x20] sm:$0xff]  }
 0x7e3   : > { %v2312_v63 = vsel %vm1355_vm1, %v2309_v56, -inf  ;;  %3662 = vmatprep.subr.bf16.mxu1 %v4331_v26 }
 0x7e4   : > { %v2465_v58 = vpop.f32.mrb[10].mxu1 }
 0x7e5   : > { %v2466_v60 = vadd.f32 %v2465_v58, %v975_v53  ;;  %v3654_v61 = vpop.f32.mrb[11].mxu1  ;;  %2001 = vmax.xlane.f32.xlu0 %v2000_v59  ;;  %v3875_v53 = vld [vmem:[%s4803_s11 + $0x30] sm:$0xff]  }
 0x7e6   : > { %3663 = vmatpush3.bf16.msra.mxu1 %v3870_v51 }
 0x7e7   : > { %v2469_v62 = vsel %vm1355_vm1, %v2466_v60, -inf  ;;  %3664 = vmatprep.subr.bf16.mxu1 %v4331_v26 }
 0x7e8   : > { %2470 = vmax.xlane.f32.xlu1 %v2469_v62 }
 0x7e9   : > { %2313 = vmax.xlane.f32.xlu0 %v2312_v63  ;;  %v3434_v63 = vld [vmem:[%s930_s24] ss:$0 sm:$0xff]  ;;  %s5329_s24 = sld [smem:[#allocation43_spill]] }
 0x7ef   : > { %s5330_s19 = scalar_lea.vmem %s5329_s24, %s4813_s15 }
 0x86d   : > { %v2085_v0 = vpop.xlane.xlu1 %2084 }
 0x86e   : > { %v2086_v1 = vsub.f32 %v2080_v41, %v2085_v0  ;;  %v1845_v2 = vpop.xlane.xlu0 %1844 }
 0x86f   : > { %v1846_v3 = vsub.f32 %v1840_v44, %v1845_v2 }
 0x870   : > { %v2087_v5 = vmul.f32 1.442695, %v2086_v1 }
 0x871   : > { %v1847_v6 = vmul.f32 1.442695, %v1846_v3 }
 0x872   : > { %3929 = vpow2.f32 %v2087_v5  ;;  %v2002_v7 = vpop.xlane.xlu0 %2001 }
 0x873   : > { %3931 = vpow2.f32 %v1847_v6  ;;  %v2003_v8 = vsub.f32 %v1997_v46, %v2002_v7  ;;  %v2480_v46 = vmul.f32 %v5005_v29, %v4960_v40  ;;  %v3871_v40 = vld [vmem:[%s4803_s11 + $0x10] sm:$0xff]   ;;  %v3872_v29 = vld [vmem:[%s4803_s11 + $0x18] sm:$0xff]  }
 0x874   : > { %3665 = vmatpush3.bf16.msra.mxu1 %v3871_v40 }
 0x875   : > { %v2004_v9 = vmul.f32 1.442695, %v2003_v8  ;;  %v2471_v10 = vpop.xlane.xlu1 %2470  ;;  %3666 = vmatprep.subr.bf16.mxu1 %v4331_v26  ;;  %v3877_v8 = vld [vmem:[%s4805_s9] ss:$8 sps:$4 sm:$0xff]  }
 0x876   : > { %v2472_v11 = vsub.f32 %v2466_v60, %v2471_v10  ;;  %v2314_v12 = vpop.xlane.xlu0 %2313  ;;  %v3882_v10 = vld [vmem:[%s4805_s9 + $0x14] ss:$8 sps:$4 sm:$0xff]  }
 0x877   : > { %3933 = vpow2.f32 %v2004_v9  ;;  %v2315_v13 = vsub.f32 %v2309_v56, %v2314_v12  ;;  %v3876_v56 = vld [vmem:[%s4803_s11 + $0x38] sm:$0xff]   ;;  %v3879_v9 = vld [vmem:[%s4805_s9 + $0x4] ss:$8 sps:$4 sm:$0xff]  }
 0x878   : > { %v2473_v14 = vmul.f32 1.442695, %v2472_v11  ;;  %3667 = vmatpush3.bf16.msra.mxu1 %v3872_v29  ;;  %v3880_v11 = vld [vmem:[%s4805_s9 + $0x10] ss:$8 sps:$4 sm:$0xff]  }
 0x879   : > { %v2316_v36 = vmul.f32 1.442695, %v2315_v13  ;;  %3668 = vmatprep.subr.bf16.mxu1 %v4331_v26  ;;  %v3443_v29 = vld [vmem:[%s5330_s19] ss:$0 sm:$0xff] }
 0x87a   : > { %3935 = vpow2.f32 %v2473_v14 }
 0x87b   : > { %3937 = vpow2.f32 %v2316_v36 }
 0x87c   : > { %v3930_v15 = vpop.eup %3929  ;;  %3669 = vmatpush3.bf16.msra.mxu1 %v3873_v52 }
 0x87d   : > { %v3932_v16 = vpop.eup %3931  ;;  %v2089_v17 = vsel %vm1355_vm1, %v3930_v15, 0.0  ;;  %3670 = vmatprep.subr.bf16.mxu1 %v4331_v26 }
 0x87e   : > { %2090 = vadd.xlane.f32.xlu1 %v2089_v17  ;;  %v1849_v18 = vsel %vm1355_vm1, %v3932_v16, 0.0  ;;  %v3885_v17 = vld [vmem:[%s4805_s9 + $0x24] ss:$8 sps:$4 sm:$0xff]  }
 0x87f   : > { %1850 = vadd.xlane.f32.xlu0 %v1849_v18  ;;  %v3883_v18 = vld [vmem:[%s4805_s9 + $0x20] ss:$8 sps:$4 sm:$0xff]  }
 0x881   : > { %v3934_v21 = vpop.eup %3933 }
 0x882   : > { %v2006_v22 = vsel %vm1355_vm1, %v3934_v21, 0.0 }
 0x883   : > { %2007 = vadd.xlane.f32.xlu0 %v2006_v22  ;;  %v3886_v22 = vld [vmem:[%s4805_s9 + $0x30] ss:$8 sps:$4 sm:$0xff]  }
 0x884   : > { %v3936_v28 = vpop.eup %3935 }
 0x885   : > { %v3938_v34 = vpop.eup %3937  ;;  %v2475_v30 = vsel %vm1355_vm1, %v3936_v28, 0.0 }
 0x886   : > { %v2318_v31 = vsel %vm1355_vm1, %v3938_v34, 0.0 }
 0x887   : > { %2476 = vadd.xlane.f32.xlu0 %v2475_v30  ;;  %2319 = vadd.xlane.f32.xlu1 %v2318_v31  ;;  %v3894_v30 = vld [vmem:[%s4805_s9 + $0x54] ss:$8 sps:$4 sm:$0xff]   ;;  %v3892_v31 = vld [vmem:[%s4805_s9 + $0x50] ss:$8 sps:$4 sm:$0xff]  }
 0x90b   : > { %v2091_v49 = vpop.xlane.xlu1 %2090 }
 0x90c   : > { %v1851_v55 = vpop.xlane.xlu0 %1850 }
 0x90d   : > { %3939 = vrcp.f32 %v1851_v55  ;;  %v3895_v55 = vld [vmem:[%s4805_s9 + $0x60] ss:$8 sps:$4 sm:$0xff]  }
 0x90e   : > { %3941 = vrcp.f32 %v2091_v49  ;;  %v3897_v49 = vld [vmem:[%s4805_s9 + $0x64] ss:$8 sps:$4 sm:$0xff]  }
 0x910   : > { %v2008_v32 = vpop.xlane.xlu0 %2007 }
 0x911   : > { %3943 = vrcp.f32 %v2008_v32  ;;  %v3900_v32 = vld [vmem:[%s4805_s9 + $0x74] ss:$8 sps:$4 sm:$0xff]  }
 0x914   : > { %v2320_v41 = vpop.xlane.xlu1 %2319  ;;  %v2477_v44 = vpop.xlane.xlu0 %2476 }
 0x915   : > { %3945 = vrcp.f32 %v2320_v41  ;;  %v3905_v41 = vld [vmem:[%s4851_s12 + $0x50] sm:$0xff]  }
 0x916   : > { %3947 = vrcp.f32 %v2477_v44  ;;  %v3909_v44 = vld [vmem:[%s4851_s12 + $0x60] sm:$0xff]  }
 0x917   : > { %v3940_v33 = vpop.eup %3939 }
 0x918   : > { %v1853_v35 = vmul.f32 %v3940_v33, %v3932_v16  ;;  %v3942_v37 = vpop.eup %3941  ;;  %v3898_v33 = vld [vmem:[%s4805_s9 + $0x70] ss:$8 sps:$4 sm:$0xff]  }
 0x919   : > { %v2093_v39 = vmul.f32 %v3942_v37, %v3930_v15  ;;  %v3902_v37 = vld [vmem:[%s4851_s12] sm:$0xff]  }
 0x91a   : > { %3618 = vmatmul.mubr.msk.f32.vlgmr.msra.gmra.mrb[8].mxu0 %vm1355_vm1, %v1853_v35  ;;  %v3901_v35 = vld [vmem:[%s4851_s12 + $0x40] sm:$0xff]  }
 0x91b   : > { %3631 = vmatpush3.msra.mxu0 %v2094_v38  ;;  %3632 = vmatprep.mubr.msk.f32.mxu0 %vm4332_vm0, %v4331_v26  ;;  %v3944_v57 = vpop.eup %3943  ;;  %v3903_v38 = vld [vmem:[%s4851_s12 + $0x48] sm:$0xff]  }
 0x91c   : > { %3635 = vmatprep.subr.mxu0 %v4331_v26  ;;  %v2010_v43 = vmul.f32 %v3944_v57, %v3934_v21  ;;  %v3888_v21 = vld [vmem:[%s4805_s9 + $0x34] ss:$8 sps:$4 sm:$0xff]  }
 0x91d   : > { %v3907_v57 = vld [vmem:[%s4851_s12 + $0x58] sm:$0xff]  }
 0x91e   : > { %3633 = vmatmul.mubr.msk.f32.vlgmr.msra.gmra.mrb[14].mxu0 %vm1355_vm1, %v2093_v39  ;;  %v3904_v39 = vld [vmem:[%s4851_s12 + $0x8] sm:$0xff]  }
 0x91f   : > { %3636 = vmatpush3.msra.mxu0 %v2011_v42  ;;  %3637 = vmatprep.mubr.msk.f32.mxu0 %vm4332_vm0, %v4331_v26  ;;  %v3946_v54 = vpop.eup %3945  ;;  %v3906_v42 = vld [vmem:[%s4851_s12 + $0x10] sm:$0xff]  }
 0x920   : > { %3645 = vmatprep.subr.mxu0 %v4331_v26  ;;  %v2322_v45 = vmul.f32 %v3946_v54, %v3938_v34  ;;  %v3948_v48 = vpop.eup %3947  ;;  %v3889_v34 = vld [vmem:[%s4805_s9 + $0x40] ss:$8 sps:$4 sm:$0xff]  }
 0x921   : > { %v2479_v47 = vmul.f32 %v3948_v48, %v3936_v28  ;;  %v3891_v28 = vld [vmem:[%s4805_s9 + $0x44] ss:$8 sps:$4 sm:$0xff]  }
 0x922   : > { %v3911_v54 = vld [vmem:[%s4851_s12 + $0x68] sm:$0xff]  }
 0x926   : > { %3638 = vmatmul.mubr.msk.f32.vlgmr.msra.gmra.mrb[14].mxu0 %vm1355_vm1, %v2010_v43  ;;  %v3908_v43 = vld [vmem:[%s4851_s12 + $0x18] sm:$0xff]  }
 0x927   : > { %3646 = vmatpush3.msra.mxu0 %v2323_v25  ;;  %3647 = vmatprep.mubr.msk.f32.mxu0 %vm4332_vm0, %v4331_v26  ;;  %v3910_v25 = vld [vmem:[%s4851_s12 + $0x20] sm:$0xff]  }
 0x928   : > { %3655 = vmatprep.subr.mxu0 %v4331_v26 }
 0x92e   : > { %3648 = vmatmul.mubr.msk.f32.vlgmr.msra.gmra.mrb[14].mxu0 %vm1355_vm1, %v2322_v45 }
 0x92f   : > { %3656 = vmatpush3.msra.mxu0 %v2480_v46  ;;  %3657 = vmatprep.mubr.msk.f32.mxu0 %vm4332_vm0, %v4331_v26 }
 0x930   : > { %2820 = vmatprep.subr.bf16.mxu0 %v3879_v9 }
 0x936   : > { %3658 = vmatmul.mubr.msk.f32.vlgmr.msra.gmra.mrb[14].mxu0 %vm1355_vm1, %v2479_v47 }
 0x937   : > { %2852 = vmatprep.mubr.bf16.mxu0 %v4330_v4  ;;  %v3874_v4 = vld [vmem:[%s4803_s11 + $0x28] sm:$0xff]   ;;  %2821 = vmatpush1.bf16.msra.mxu0 %v3877_v8 }
 0x938   : > { %3671 = vmatpush3.bf16.msra.mxu1 %v3874_v4  ;;  %2822 = vmatprep.subr.bf16.mxu0 %v3882_v10 }
 0x939   : > { %3672 = vmatprep.subr.bf16.mxu1 %v4331_v26 }
 0x93b   : > { %2823 = vmatpush1.bf16.msra.mxu0 %v3880_v11 }
 0x93c   : > { %3673 = vmatpush3.bf16.msra.mxu1 %v3875_v53  ;;  %2824 = vmatprep.subr.bf16.mxu0 %v3885_v17 }
 0x93d   : > { %3674 = vmatprep.subr.bf16.mxu1 %v4331_v26 }
 0x93f   : > { %2825 = vmatpush1.bf16.msra.mxu0 %v3883_v18 }
 0x940   : > { %3675 = vmatpush3.bf16.msra.mxu1 %v3876_v56  ;;  %2826 = vmatprep.subr.bf16.mxu0 %v3888_v21 }
 0x941   : > { %3538 = vmatprep.subr.bf16.mxu1 %v3901_v35 }
 0x943   : > { %2827 = vmatpush1.bf16.msra.mxu0 %v3886_v22 }
 0x944   : > { %2828 = vmatprep.subr.bf16.mxu0 %v3891_v28 }
 0x947   : > { %2829 = vmatpush1.bf16.msra.mxu0 %v3889_v34 }
 0x948   : > { %2830 = vmatprep.subr.bf16.mxu0 %v3894_v30 }
 0x94b   : > { %2831 = vmatpush1.bf16.msra.mxu0 %v3892_v31 }
 0x94c   : > { %2832 = vmatprep.subr.bf16.mxu0 %v3897_v49 }
 0x94f   : > { %2833 = vmatpush1.bf16.msra.mxu0 %v3895_v55 }
 0x950   : > { %2834 = vmatprep.subr.bf16.mxu0 %v3900_v32 }
 0x953   : > { %2835 = vmatpush1.bf16.msra.mxu0 %v3898_v33 }
 0x9ed   : > { %v1924_v58 = vpop.f32.mrb[8].mxu0 }
 0x9ee   : > { %v3619_v59 = vpop.f32.mrb[9].mxu0 }
 0xa09   : > { %v2550_v60 = vpop.f32.mrb[14].mxu0 }
 0xa0a   : > { %v2555_v61 = vpack.c.bf16 %v2550_v60, %v1924_v58  ;;  %v3659_v62 = vpop.f32.mrb[15].mxu0  ;;  %v3444_v58 = vld [vmem:[%s5332_s29] ss:$0 sm:$0xff] }
 0xa0c   : > { %3677 = vmatmul.mubr.bf16.vlgmr.msra.gmra.mrb[12].mxu1 %v2555_v61 }
 0xa0d   : > { %3539 = vmatpush3.bf16.msra.mxu1 %v3902_v37 }
 0xa0e   : > { %3540 = vmatprep.subr.bf16.mxu1 %v3903_v38 }
 0xa11   : > { %3541 = vmatpush3.bf16.msra.mxu1 %v3904_v39 }
 0xa12   : > { %3542 = vmatprep.subr.bf16.mxu1 %v3905_v41 }
 0xa15   : > { %3543 = vmatpush3.bf16.msra.mxu1 %v3906_v42 }
 0xa16   : > { %3544 = vmatprep.subr.bf16.mxu1 %v3907_v57 }
 0xa19   : > { %3545 = vmatpush3.bf16.msra.mxu1 %v3908_v43 }
 0xa1a   : > { %3546 = vmatprep.subr.bf16.mxu1 %v3909_v44 }
 0xa1d   : > { %3547 = vmatpush3.bf16.msra.mxu1 %v3910_v25 }
 0xa1e   : > { %3548 = vmatprep.subr.bf16.mxu1 %v3911_v54 }
 0xadf   : > { %v2661_v0 = vpop.f32.mrb[12].mxu1 }
 0xae0   : > { %v2662_v1 = vadd.f32 %v3434_v63, %v2661_v0  ;;  %v3678_v26 = vpop.f32.mrb[13].mxu1  ;;  %v3913_v0 = vld [vmem:[%s4851_s12 + $0x70] sm:$0xff]  }
 0xae1   : > { %v2664_v2 = vpop.f32.mrb[14].mxu1  ;;  %v3915_v26 = vld [vmem:[%s4851_s12 + $0x78] sm:$0xff]  }
 0xae2   : > { %v2665_v3 = vadd.f32 %v3434_v63, %v2664_v2  ;;  %v3679_v5 = vpop.f32.mrb[15].mxu1  ;;  %v2668_v6 = vadd.f32 %v2662_v1, %v4871_v19  ;;  %v3912_v63 = vld [vmem:[%s4851_s12 + $0x28] sm:$0xff]   ;;  %v3914_v1 = vld [vmem:[%s4851_s12 + $0x30] sm:$0xff]   ;;  %v3916_v2 = vld [vmem:[%s4851_s12 + $0x38] sm:$0xff]  }
 0xae3   : > { %3549 = vmatpush3.bf16.msra.mxu1 %v3912_v63 }
 0xae4   : > { %2672 = vadd.xlane.f32.xlu1 %v2668_v6  ;;  %v2669_v7 = vadd.f32 %v2665_v3, %v4873_v20  ;;  %3550 = vmatprep.subr.bf16.mxu1 %v3913_v0  ;;  %v2728_v3 = vld [vmem:[%s4837_s5] sm:$0x3] }
 0xae5   : > { %v2733_v5 = vrot.slane %v2728_v3, %v1017_v27 }
 0xae6   : > { %2674 = vadd.xlane.f32.xlu0 %v2669_v7 }
 0xae7   : > { %3551 = vmatpush3.bf16.msra.mxu1 %v3914_v1 }
 0xae8   : > { %3552 = vmatprep.subr.bf16.mxu1 %v3915_v26 }
 0xaeb   : > { %3553 = vmatpush3.bf16.msra.mxu1 %v3916_v2 }
 0xb71   : > { %v2673_v12 = vpop.xlane.xlu1 %2672 }
 0xb72   : > { %v2677_v13 = vmul.f32 0.0078125, %v2673_v12 }
 0xb73   : > { %v2675_v14 = vpop.xlane.xlu0 %2674 }
 0xb74   : > { %v5094_v19 = vsub.f32 %v2668_v6, %v2677_v13  ;;  %v2678_v20 = vmul.f32 0.0078125, %v2675_v14  ;;  %v2737_v6 = vrot.slane %v2728_v3, %v1021_v24 }
 0xb76   : > { %v5096_v36 = vsub.f32 %v2669_v7, %v2678_v20  ;;  %v2681_v15 = vmul.f32 %v5094_v19, %v5094_v19 }
 0xb78   : > { %2683 = vadd.xlane.f32.xlu1 %v2681_v15  ;;  %v2682_v16 = vmul.f32 %v5096_v36, %v5096_v36 }
 0xb7a   : > { %2685 = vadd.xlane.f32.xlu0 %v2682_v16 }
 0xc05   : > { %v2684_v45 = vpop.xlane.xlu1 %2683 }
 0xc06   : > { %v2687_v46 = vmul.f32 0.0078125, %v2684_v45 }
 0xc07   : > { %v2686_v48 = vpop.xlane.xlu0 %2685 }
 0xc08   : > { %v2689_v47 = vadd.f32 1e-05, %v2687_v46  ;;  %v2688_v50 = vmul.f32 0.0078125, %v2686_v48  ;;  %v3478_v46 = vld [vmem:[%s946_s18] ss:$0 sm:$0xff] }
 0xc0a   : > { %3949 = vrsqrt.f32 %v2689_v47  ;;  %v2690_v51 = vadd.f32 1e-05, %v2688_v50  ;;  %v3479_v50 = vld [vmem:[%s949_s6] ss:$0 sm:$0xff] }
 0xc0c   : > { %3951 = vrsqrt.f32 %v2690_v51 }
 0xc14   : > { %v3950_v40 = vpop.eup %3949 }
 0xc15   : > { %v2693_v52 = vmul.f32 %v3950_v40, %v5094_v19 }
 0xc16   : > { %v3952_v4 = vpop.eup %3951 }
 0xc17   : > { %v2694_v53 = vmul.f32 %v3952_v4, %v5096_v36  ;;  %v2701_v56 = vmul.f32 %v3443_v29, %v2693_v52 }
 0xc19   : > { %v2702_v59 = vmul.f32 %v3443_v29, %v2694_v53  ;;  %v2709_v60 = vadd.f32 %v3444_v58, %v2701_v56 }
 0xc1b   : > { %v2710_v61 = vadd.f32 %v3444_v58, %v2702_v59 }
 0xc1d   : > { %v2711_v62 = vpack.c.bf16 %v2710_v61, %v2709_v60 }
 0xc1f   : > { %2853 = vmatmul.mubr.bf16.vlgmr.msra.gmra.mrb[16].mxu0 %v2711_v62 }
 0xcf2   : > { %v2854_v7 = vpop.f32.mrb[16].mxu0 }
 0xcf3   : > { %v2855_v8 = vadd.f32 %v2854_v7, %v2733_v5  ;;  %v2856_v9 = vpop.f32.mrb[17].mxu0 }
 0xcf4   : > { %v2857_v10 = vadd.f32 %v2856_v9, %v2737_v6  ;;  %v2858_v11 = vpop.f32.mrb[18].mxu0 }
 0xcf5   : > { %v2859_v12 = vadd.f32 %v2858_v11, %v2733_v5  ;;  %v2860_v13 = vpop.f32.mrb[19].mxu0  ;;  %v2863_v19 = vmax.f32 %v2855_v8, 0.0 }
 0xcf6   : > { %v2861_v14 = vadd.f32 %v2860_v13, %v2737_v6  ;;  %v2864_v36 = vmax.f32 %v2857_v10, 0.0 }
 0xcf7   : > { %v2865_v20 = vmax.f32 %v2859_v12, 0.0 }
 0xcf8   : > { %v2866_v15 = vmax.f32 %v2861_v14, 0.0 }
 0xcf9   : > { %v2867_v16 = vpack.c.bf16 %v2865_v20, %v2863_v19 }
 0xcfa   : > { %v2868_v17 = vpack.c.bf16 %v2866_v15, %v2864_v36 }
 0xcfc   : > { %3036 = vmatprep.mubr.bf16.mxu1 %v2868_v17 }
 0xcfd   : > { %3037 = vmatmul.mubr.bf16.vlgmr.msra.gmra.mrb[16].mxu1 %v2867_v16 }
 0xdd0   : > { %v3554_v27 = vpop.f32.mrb[16].mxu1 }
 0xdd1   : > { %v3555_v24 = vpop.f32.mrb[17].mxu1 }
 0xdd2   : > { %v3556_v18 = vadd.f32 %v3555_v24, %v3554_v27  ;;  %v3557_v21 = vpop.f32.mrb[18].mxu1 }
 0xdd3   : > { %v3558_v22 = vpop.f32.mrb[19].mxu1 }
 0xdd4   : > { %v3039_v28 = vadd.f32 %v3556_v18, %v3461_v23  ;;  %v3559_v34 = vadd.f32 %v3558_v22, %v3557_v21 }
 0xdd6   : > { %v3042_v30 = vadd.f32 %v3559_v34, %v3461_v23  ;;  %v3045_v31 = vadd.f32 %v3039_v28, %v2709_v60 }
 0xdd8   : > { %3049 = vadd.xlane.f32.xlu1 %v3045_v31  ;;  %v3046_v49 = vadd.f32 %v3042_v30, %v2710_v61 }
 0xdda   : > { %3051 = vadd.xlane.f32.xlu0 %v3046_v49 }
 0xe65   : > { %v3050_v55 = vpop.xlane.xlu1 %3049 }
 0xe66   : > { %v3053_v32 = vmul.f32 0.0078125, %v3050_v55 }
 0xe67   : > { %v3052_v33 = vpop.xlane.xlu0 %3051 }
 0xe68   : > { %v3055_v35 = vsub.f32 %v3045_v31, %v3053_v32  ;;  %v3054_v37 = vmul.f32 0.0078125, %v3052_v33 }
 0xe6a   : > { %v3056_v38 = vsub.f32 %v3046_v49, %v3054_v37  ;;  %v3057_v39 = vmul.f32 %v3055_v35, %v3055_v35 }
 0xe6c   : > { %3059 = vadd.xlane.f32.xlu1 %v3057_v39  ;;  %v3058_v41 = vmul.f32 %v3056_v38, %v3056_v38 }
 0xe6e   : > { %3061 = vadd.xlane.f32.xlu0 %v3058_v41 }
 0xef9   : > { %v3060_v42 = vpop.xlane.xlu1 %3059 }
 0xefa   : > { %v3063_v57 = vmul.f32 0.0078125, %v3060_v42 }
 0xefb   : > { %v3062_v43 = vpop.xlane.xlu0 %3061 }
 0xefc   : > { %v3065_v44 = vadd.f32 1e-05, %v3063_v57  ;;  %v3064_v25 = vmul.f32 0.0078125, %v3062_v43 }
 0xefe   : > { %3953 = vrsqrt.f32 %v3065_v44  ;;  %v3066_v54 = vadd.f32 1e-05, %v3064_v25 }
 0xf00   : > { %3955 = vrsqrt.f32 %v3066_v54 }
 0xf08   : > { %v3954_v45 = vpop.eup %3953 }
 0xf09   : > { %v3069_v48 = vmul.f32 %v3954_v45, %v3055_v35 }
 0xf0a   : > { %v3956_v47 = vpop.eup %3955 }
 0xf0b   : > { %v3077_v51 = vmul.f32 %v3478_v46, %v3069_v48  ;;  %v3070_v40 = vmul.f32 %v3956_v47, %v3056_v38  ;;  %3092 = sbr.rel (%p3480_p13) target bundleno = 3858 (0xf12), region = 136 }
 0xf0d   : > { %v3085_v29 = vadd.f32 %v3479_v50, %v3077_v51  ;;  %v3078_v52 = vmul.f32 %v3478_v46, %v3070_v40 }
 0xf0f   : > { %3087 = vst [vmem:[#allocation2] sm:$0xff] %v3085_v29  ;;  %v3086_v4 = vadd.f32 %v3479_v50, %v3078_v52  ;;  %3093 = vst [vmem:[#allocation18] sm:$0xff] (!%p3480_p13), %v3085_v29 }
 0xf11   : > { %3088 = vst [vmem:[#allocation2 + $0x8] sm:$0xff] %v3086_v4  ;;  %3094 = vst [vmem:[#allocation18 + $0x8] sm:$0xff] (!%p3480_p13), %v3086_v4 }
 0xf12 PF: > { %s5337_s18 = sld [smem:[#allocation29_spill]]  ;;  %s4335_s28 = smov [#allocation18]  }
 0xf13   : > { %s3104_s30 = sshll.u32 %s4335_s28, 4  ;;  %s3105_s30 = int_to_ptr.vmem [resolvable:$true] %s3104_s30 }
 0xf14   : > { %s4217_s15 = scalar_lea.vmem %s3105_s30, 256  ;;  %p4224_p1 = scmp.lt.s32.totalorder %s3105_s30, %s3105_s30 }
 0xf15   : > { %p4218_p6 = scmp.ne.s32.totalorder %s3105_s30, %s4217_s15  ;;  %p4225_p5 = scmp.lt.s32.totalorder %s4217_s15, %s4217_s15 }
 0xf17   : > { %p4226_p7 = por %p4225_p5, %p4224_p1 }
 0xf18   : > { %p3768_p2 = scmp.eq.s32.totalorder %s5337_s18, 1 }
 0xf1a   : > { %p4219_p8 = pnand %p4218_p6, %p3768_p2 }
 0xf1c   : > { %p4220_p4 = pneg %p4219_p8 }
 0xf1e   : > { %p4227_p3 = pnand %p4226_p7, %p4220_p4 }
 0xf20   : > { %4230 = shalt.err (!%p4227_p3)
}
 0xf21   : > { %s5338_s10 = sld [smem:[#allocation50_spill]] }
 0xf27   : > { %s4231_s21 = scalar_lea.hbm %s5338_s10, 256 }
 0xf28   : > { %p4232_p9 = scmp.ne.s32.totalorder %s5338_s10, %s4231_s21  ;;  %p4237_p12 = scmp.lt.u32.totalorder %s4231_s21, %s5338_s10 }
 0xf2a   : > { %p4233_p0 = pnand %p4232_p9, %p3768_p2 }
 0xf2c   : > { %p4234_p10 = pneg %p4233_p0 }
 0xf2e   : > { %p4239_p11 = pnand %p4237_p12, %p4234_p10 }
 0xf30   : > { %4242 = shalt.err (!%p4239_p11)
}
 0xf31   : > { %s4336_s19 = smov 128   ;;  %s4337_s22 = smov 8  }
 0xf32   : > { %3725 = dma.vmem_to_hbm [thread:$0]  (%p3768_p2), %s3105_s30, 256, %s5338_s10, [#allocation5], %s4336_s19, %s4336_s19, %s4337_s22  }
 0xf33   : > { %4288 = dma.done.wait (%p3768_p2), [#allocation5], 256  }
 0xf34   : > { %4290 = vsyncadd (%p3768_p2), [#allocation5], 4294967040 }
 0xf35 PF: > { %s5339_s29 = sld [smem:[#allocation28_spill]]  ;;  %s5340_s27 = sld [smem:[#allocation25_spill]] }
 0xf36   : > { %s5341_s28 = sld [smem:[#allocation26_spill]]  ;;  %s5343_s5 = sld [smem:[#allocation31_spill]] }
 0xf37   : > { %s5344_s30 = smov %s4309_s0 }
 0xf3b   : > { %s38_s19 = sadd.s32 1, %s5339_s29   ;;  %s5342_s29 = sld [smem:[#allocation33_spill]] }
 0xf3c   : > { %p35_p13 = scmp.ge.s32.totalorder %s38_s19, 4   ;;  %s5345_s0 = smov %s5343_s5 }
 0xf3e   :  { %37 = sbr.rel (!%p35_p13) target bundleno = 28 (0x1c), region = 223 }
 0xf45   :  { %3120 = vsyncpa [#allocation4], 1 }
 0xf46   :  { %3122 = vsyncpa [#allocation4 + $0x1], 1 }
 0xf47   :  { %3123 = vsyncpa [#allocation7], 1 }
 0xf48   :  { %3124 = vsyncpa [#allocation10], 1 }
 0xf49   :  { %3125 = vsyncpa [#allocation13], 1 }
 0xf4a   :  { %3127 = vsyncpa [#allocation13 + $0x1], 1 }
 0xf4b   :  { %3128 = vsyncpa [#allocation16], 1 }
 0xf4c   :  { %3130 = vsyncpa [#allocation16 + $0x1], 1 }
 0xf4d   :  { %3131 = vsyncpa [#allocation5], 1 }
 0xf4e   :  { %3133 = vsyncpa [#allocation5 + $0x1], 1 }

</bundles_post_ra>
